<compile_context>
chip_gen: v7x
topology: tpu7x:2x2x1
jax: 0.10.0
libtpu: 0.0.40
codegen_flags: <defaults>
</compile_context>

<pallas_src>
import jax
import jax.numpy as jnp
from jax.experimental import pallas as pl
from jax.experimental.pallas import tpu as pltpu


def netd_kernel(x_ref, m_ref, g_ref, h_ref,
                w1a_ref, w1b_ref, b1_ref, w2_ref, b2_ref, w3_ref, b3_ref,
                out_ref):
    # Elementwise mask math in f32 on the VPU (v5e has no bf16 VPU).
    x = x_ref[...]
    m = m_ref[...]
    g = g_ref[...]
    inp = m * x + (1.0 - m) * g                              # (tile_b, D) f32

    # bf16 operands into the MXU; f32 accumulation via preferred_element_type.
    inp_bf = inp.astype(jnp.bfloat16)
    h_bf = h_ref[...].astype(jnp.bfloat16)

    # fc1 on concat([inp, h]) expressed as two K=D dots against the row halves
    # of W1 -- avoids the non-128-aligned lane concat; MXU has plenty of slack.
    h1 = (jnp.dot(inp_bf, w1a_ref[...], preferred_element_type=jnp.float32)
          + jnp.dot(h_bf, w1b_ref[...], preferred_element_type=jnp.float32)
          + b1_ref[...])
    # bf16 intermediates halve activation store traffic between matmuls
    # (important on v5e's single vst slot). On v7x, where HBM is ~2x faster
    # and the VPU may become the co-bottleneck, these casts could be dropped.
    h1 = jnp.maximum(h1, 0.0).astype(jnp.bfloat16)           # ReLU

    h2 = jnp.dot(h1, w2_ref[...], preferred_element_type=jnp.float32) + b2_ref[...]
    h2 = jnp.maximum(h2, 0.0).astype(jnp.bfloat16)           # ReLU

    h3 = jnp.dot(h2, w3_ref[...], preferred_element_type=jnp.float32) + b3_ref[...]

    # Sigmoid: exp and approx reciprocal both run on the EUP slot.
    out_ref[...] = pl.reciprocal(1.0 + jnp.exp(-h3), approx=True).astype(out_ref.dtype)


def _round_up(n, k):
    return (n + k - 1) // k * k


def netd_forward(x, m, g, h, prep_params, *, tile_b=2048):
    """NetD forward pass as one batch-gridded Pallas kernel call.

    `prep_params` must come from `prepare_netd_params` (weights already in
    bf16, fc1 split into its two row halves) so no per-call weight prep runs.
    Inputs are taken as f32 and cast inside the kernel (no wrapper-side cast
    or pad passes over the batch).
    """
    w1a, w1b, b1, w2, b2, w3, b3 = prep_params
    B, D = x.shape
    assert w1a.shape == (D, 256) and w1b.shape == (D, 256)
    assert w2.shape == (256, 128) and w3.shape == (128, D)

    # ---- Batch tile selection ------------------------------------------------
    # Keep >= 2 grid blocks whenever B allows, so the ("parallel",) grid axis
    # can be sharded across both TensorCores on v7x; stay sublane-aligned.
    if B > 16:
        tile_b = min(tile_b, _round_up(pl.cdiv(B, 2), 16))
    tile_b = int(max(16, min(tile_b, _round_up(B, 16))))
    n_blocks = pl.cdiv(B, tile_b)

    # Ragged last block: rows >= B are read as undefined data and the
    # corresponding output rows are dropped on writeback -- no jnp.pad pass.
    row_spec = pl.BlockSpec((tile_b, D), lambda i: (i, 0))
    resident = lambda a: pl.BlockSpec(a.shape, lambda i: (0, 0))  # weights stay in VMEM

    out = pl.pallas_call(
        netd_kernel,
        out_shape=jax.ShapeDtypeStruct((B, D), jnp.bfloat16),     # bf16 writeback
        grid=(n_blocks,),
        in_specs=[row_spec, row_spec, row_spec, row_spec,
                  resident(w1a), resident(w1b), resident(b1),
                  resident(w2), resident(b2),
                  resident(w3), resident(b3)],
        out_specs=pl.BlockSpec((tile_b, D), lambda i: (i, 0)),
        compiler_params=pltpu.CompilerParams(dimension_semantics=("parallel",)),
    )(x, m, g, h, w1a, w1b, b1, w2, b2, w3, b3)

    return out


def init_netd_params(key, feature_dim):
    """Deterministic xavier_normal weights + torch-default uniform biases (f32).

    Weights are stored as (in_features, out_features) -- transposed vs.
    torch.nn.Linear -- so the hot path is `act @ W + b`.
    """
    # TODO(synk): the original module re-randomizes weights on every forward()
    # via self.init_weight(); we use one deterministic init instead.
    dims = [(feature_dim * 2, 256), (256, 128), (128, feature_dim)]
    params = []
    for i, (fan_in, fan_out) in enumerate(dims):
        kw, kb = jax.random.split(jax.random.fold_in(key, i))
        std = (2.0 / (fan_in + fan_out)) ** 0.5          # xavier_normal_ gain=1
        w = std * jax.random.normal(kw, (fan_in, fan_out), jnp.float32)
        bound = 1.0 / (fan_in ** 0.5)                    # torch Linear default bias init
        b = jax.random.uniform(kb, (1, fan_out), jnp.float32, -bound, bound)
        params.extend([w, b])
    return tuple(params)


def prepare_netd_params(params, feature_dim):
    """One-time kernel-side weight prep (hoisted out of the forward pass):
    split W1 into its two K=D row halves and cast weight matrices to bf16."""
    w1, b1, w2, b2, w3, b3 = params
    D = feature_dim
    w1a = w1[:D, :].astype(jnp.bfloat16)
    w1b = w1[D:, :].astype(jnp.bfloat16)
    return (w1a, w1b, b1, w2.astype(jnp.bfloat16), b2, w3.astype(jnp.bfloat16), b3)


def netd_reference(x, m, g, h, params):
    """Plain-JAX f32 reference for correctness checking."""
    w1, b1, w2, b2, w3, b3 = params
    inp = m * x + (1.0 - m) * g
    inp = jnp.concatenate([inp, h], axis=1)
    o = jax.nn.relu(inp @ w1 + b1)
    o = jax.nn.relu(o @ w2 + b2)
    return jax.nn.sigmoid(o @ w3 + b3)


if __name__ == "__main__":
    key = jax.random.PRNGKey(0)
    B, D = 500, 32   # B % tile -> exercises the ragged last block + 2-step grid

    kx, km, kg, kh, kp = jax.random.split(key, 5)
    x = jax.random.normal(kx, (B, D), jnp.float32)
    m = (jax.random.uniform(km, (B, D)) > 0.5).astype(jnp.float32)  # missing mask
    g = jax.random.normal(kg, (B, D), jnp.float32)                  # generator output
    h = jax.random.uniform(kh, (B, D), jnp.float32)                 # hint matrix

    params = init_netd_params(kp, D)
    prep = prepare_netd_params(params, D)

    out = netd_forward(x, m, g, h, prep, tile_b=2048)
    out = jax.block_until_ready(out)

    ref = netd_reference(x, m, g, h, params)
    assert out.shape == (B, D)
    max_err = float(jnp.max(jnp.abs(out.astype(jnp.float32) - ref)))
    assert max_err < 2e-2, f"mismatch vs reference: max abs err {max_err}"

    print("KERNEL_OK")
</pallas_src>

<mosaic_0001>
module attributes {stable_mosaic.version = 11 : i64} {
  func.func @netd_kernel(%arg0: i32, %arg1: memref<256x32xf32, #tpu.memory_space<vmem>>, %arg2: memref<256x32xf32, #tpu.memory_space<vmem>>, %arg3: memref<256x32xf32, #tpu.memory_space<vmem>>, %arg4: memref<256x32xf32, #tpu.memory_space<vmem>>, %arg5: memref<32x256xbf16, #tpu.memory_space<vmem>>, %arg6: memref<32x256xbf16, #tpu.memory_space<vmem>>, %arg7: memref<1x256xf32, #tpu.memory_space<vmem>>, %arg8: memref<256x128xbf16, #tpu.memory_space<vmem>>, %arg9: memref<1x128xf32, #tpu.memory_space<vmem>>, %arg10: memref<128x32xbf16, #tpu.memory_space<vmem>>, %arg11: memref<1x32xf32, #tpu.memory_space<vmem>>, %arg12: memref<256x32xbf16, #tpu.memory_space<vmem>>) attributes {dimension_semantics = [#tpu.dimension_semantics<parallel>], iteration_bounds = array<i64: 2>, scalar_prefetch = 0 : i64, scratch_operands = 0 : i64, tpu.core_type = #tpu.core_type<tc>, window_params = [{transform_indices = @transform_0, window_bounds = array<i64: 256, 32>}, {transform_indices = @transform_1, window_bounds = array<i64: 256, 32>}, {transform_indices = @transform_2, window_bounds = array<i64: 256, 32>}, {transform_indices = @transform_3, window_bounds = array<i64: 256, 32>}, {pipeline_mode = #tpu.pipeline_mode<synchronous>, transform_indices = @transform_4, window_bounds = array<i64: 32, 256>}, {pipeline_mode = #tpu.pipeline_mode<synchronous>, transform_indices = @transform_5, window_bounds = array<i64: 32, 256>}, {pipeline_mode = #tpu.pipeline_mode<synchronous>, transform_indices = @transform_6, window_bounds = array<i64: 1, 256>}, {pipeline_mode = #tpu.pipeline_mode<synchronous>, transform_indices = @transform_7, window_bounds = array<i64: 256, 128>}, {pipeline_mode = #tpu.pipeline_mode<synchronous>, transform_indices = @transform_8, window_bounds = array<i64: 1, 128>}, {pipeline_mode = #tpu.pipeline_mode<synchronous>, transform_indices = @transform_9, window_bounds = array<i64: 128, 32>}, {pipeline_mode = #tpu.pipeline_mode<synchronous>, transform_indices = @transform_10, window_bounds = array<i64: 1, 32>}, {transform_indices = @transform_11, window_bounds = array<i64: 256, 32>}]} {
    %c0 = arith.constant 0 : index
    %c0_0 = arith.constant 0 : index
    %0 = vector.load %arg1[%c0, %c0_0] : memref<256x32xf32, #tpu.memory_space<vmem>>, vector<256x32xf32>
    %c0_1 = arith.constant 0 : index
    %c0_2 = arith.constant 0 : index
    %1 = vector.load %arg2[%c0_1, %c0_2] : memref<256x32xf32, #tpu.memory_space<vmem>>, vector<256x32xf32>
    %c0_3 = arith.constant 0 : index
    %c0_4 = arith.constant 0 : index
    %2 = vector.load %arg3[%c0_3, %c0_4] : memref<256x32xf32, #tpu.memory_space<vmem>>, vector<256x32xf32>
    %3 = arith.mulf %1, %0 : vector<256x32xf32>
    %cst = arith.constant 1.000000e+00 : f32
    %4 = vector.broadcast %cst : f32 to vector<256x32xf32>
    %5 = arith.subf %4, %1 : vector<256x32xf32>
    %6 = arith.mulf %5, %2 : vector<256x32xf32>
    %7 = arith.addf %3, %6 : vector<256x32xf32>
    %8 = arith.truncf %7 : vector<256x32xf32> to vector<256x32xbf16>
    %c0_5 = arith.constant 0 : index
    %c0_6 = arith.constant 0 : index
    %9 = vector.load %arg4[%c0_5, %c0_6] : memref<256x32xf32, #tpu.memory_space<vmem>>, vector<256x32xf32>
    %10 = arith.truncf %9 : vector<256x32xf32> to vector<256x32xbf16>
    %c0_7 = arith.constant 0 : index
    %c0_8 = arith.constant 0 : index
    %11 = vector.load %arg5[%c0_7, %c0_8] : memref<32x256xbf16, #tpu.memory_space<vmem>>, vector<32x256xbf16>
    %cst_9 = arith.constant dense<0.000000e+00> : vector<256x256xf32>
    %12 = tpu.matmul %8, %11, %cst_9 {dimension_numbers = #tpu.dot_dimension_numbers<[1], [0], [0], [1], [0, 0, 1, 1], [], []>} : vector<256x32xbf16>, vector<32x256xbf16>, vector<256x256xf32> -> vector<256x256xf32>
    %c0_10 = arith.constant 0 : index
    %c0_11 = arith.constant 0 : index
    %13 = vector.load %arg6[%c0_10, %c0_11] : memref<32x256xbf16, #tpu.memory_space<vmem>>, vector<32x256xbf16>
    %cst_12 = arith.constant dense<0.000000e+00> : vector<256x256xf32>
    %14 = tpu.matmul %10, %13, %cst_12 {dimension_numbers = #tpu.dot_dimension_numbers<[1], [0], [0], [1], [0, 0, 1, 1], [], []>} : vector<256x32xbf16>, vector<32x256xbf16>, vector<256x256xf32> -> vector<256x256xf32>
    %15 = arith.addf %12, %14 : vector<256x256xf32>
    %c0_13 = arith.constant 0 : index
    %c0_14 = arith.constant 0 : index
    %16 = vector.load %arg7[%c0_13, %c0_14] : memref<1x256xf32, #tpu.memory_space<vmem>>, vector<1x256xf32>
    %17 = vector.broadcast %16 : vector<1x256xf32> to vector<256x256xf32>
    %18 = arith.addf %15, %17 : vector<256x256xf32>
    %cst_15 = arith.constant 0.000000e+00 : f32
    %19 = vector.broadcast %cst_15 : f32 to vector<256x256xf32>
    %20 = arith.maximumf %18, %19 : vector<256x256xf32>
    %21 = arith.truncf %20 : vector<256x256xf32> to vector<256x256xbf16>
    %c0_16 = arith.constant 0 : index
    %c0_17 = arith.constant 0 : index
    %22 = vector.load %arg8[%c0_16, %c0_17] : memref<256x128xbf16, #tpu.memory_space<vmem>>, vector<256x128xbf16>
    %cst_18 = arith.constant dense<0.000000e+00> : vector<256x128xf32>
    %23 = tpu.matmul %21, %22, %cst_18 {dimension_numbers = #tpu.dot_dimension_numbers<[1], [0], [0], [1], [0, 0, 1, 1], [], []>} : vector<256x256xbf16>, vector<256x128xbf16>, vector<256x128xf32> -> vector<256x128xf32>
    %c0_19 = arith.constant 0 : index
    %c0_20 = arith.constant 0 : index
    %24 = vector.load %arg9[%c0_19, %c0_20] : memref<1x128xf32, #tpu.memory_space<vmem>>, vector<1x128xf32>
    %25 = vector.broadcast %24 : vector<1x128xf32> to vector<256x128xf32>
    %26 = arith.addf %23, %25 : vector<256x128xf32>
    %cst_21 = arith.constant 0.000000e+00 : f32
    %27 = vector.broadcast %cst_21 : f32 to vector<256x128xf32>
    %28 = arith.maximumf %26, %27 : vector<256x128xf32>
    %29 = arith.truncf %28 : vector<256x128xf32> to vector<256x128xbf16>
    %c0_22 = arith.constant 0 : index
    %c0_23 = arith.constant 0 : index
    %30 = vector.load %arg10[%c0_22, %c0_23] : memref<128x32xbf16, #tpu.memory_space<vmem>>, vector<128x32xbf16>
    %cst_24 = arith.constant dense<0.000000e+00> : vector<256x32xf32>
    %31 = tpu.matmul %29, %30, %cst_24 {dimension_numbers = #tpu.dot_dimension_numbers<[1], [0], [0], [1], [0, 0, 1, 1], [], []>} : vector<256x128xbf16>, vector<128x32xbf16>, vector<256x32xf32> -> vector<256x32xf32>
    %c0_25 = arith.constant 0 : index
    %c0_26 = arith.constant 0 : index
    %32 = vector.load %arg11[%c0_25, %c0_26] : memref<1x32xf32, #tpu.memory_space<vmem>>, vector<1x32xf32>
    %33 = vector.broadcast %32 : vector<1x32xf32> to vector<256x32xf32>
    %34 = arith.addf %31, %33 : vector<256x32xf32>
    %cst_27 = arith.constant 0.000000e+00 : f32
    %35 = vector.broadcast %cst_27 : f32 to vector<256x32xf32>
    %36 = arith.subf %35, %34 : vector<256x32xf32>
    %37 = math.exp %36 : vector<256x32xf32>
    %cst_28 = arith.constant 1.000000e+00 : f32
    %38 = vector.broadcast %cst_28 : f32 to vector<256x32xf32>
    %39 = arith.addf %38, %37 : vector<256x32xf32>
    %40 = tpu.reciprocal %39 {approx = true} : vector<256x32xf32> -> vector<256x32xf32>
    %41 = arith.truncf %40 : vector<256x32xf32> to vector<256x32xbf16>
    %c0_29 = arith.constant 0 : index
    %c0_30 = arith.constant 0 : index
    %42 = vector.load %arg12[%c0_29, %c0_30] : memref<256x32xbf16, #tpu.memory_space<vmem>>, vector<256x32xbf16>
    tpu.vector_store %arg12[%c0_29, %c0_30], %41 {strides = array<i32>} : memref<256x32xbf16, #tpu.memory_space<vmem>>, vector<256x32xbf16>,
    return
  }
  func.func @transform_0(%arg0: i32) -> (i32, i32) {
    %c0_i32 = arith.constant 0 : i32
    %c0_i32_0 = arith.constant 0 : i32
    return %arg0, %c0_i32 : i32, i32
  }
  func.func @transform_1(%arg0: i32) -> (i32, i32) {
    %c0_i32 = arith.constant 0 : i32
    %c0_i32_0 = arith.constant 0 : i32
    return %arg0, %c0_i32 : i32, i32
  }
  func.func @transform_2(%arg0: i32) -> (i32, i32) {
    %c0_i32 = arith.constant 0 : i32
    %c0_i32_0 = arith.constant 0 : i32
    return %arg0, %c0_i32 : i32, i32
  }
  func.func @transform_3(%arg0: i32) -> (i32, i32) {
    %c0_i32 = arith.constant 0 : i32
    %c0_i32_0 = arith.constant 0 : i32
    return %arg0, %c0_i32 : i32, i32
  }
  func.func @transform_4(%arg0: i32) -> (i32, i32) {
    %c0_i32 = arith.constant 0 : i32
    %c0_i32_0 = arith.constant 0 : i32
    %c0_i32_1 = arith.constant 0 : i32
    return %c0_i32, %c0_i32_0 : i32, i32
  }
  func.func @transform_5(%arg0: i32) -> (i32, i32) {
    %c0_i32 = arith.constant 0 : i32
    %c0_i32_0 = arith.constant 0 : i32
    %c0_i32_1 = arith.constant 0 : i32
    return %c0_i32, %c0_i32_0 : i32, i32
  }
  func.func @transform_6(%arg0: i32) -> (i32, i32) {
    %c0_i32 = arith.constant 0 : i32
    %c0_i32_0 = arith.constant 0 : i32
    %c0_i32_1 = arith.constant 0 : i32
    return %c0_i32, %c0_i32_0 : i32, i32
  }
  func.func @transform_7(%arg0: i32) -> (i32, i32) {
    %c0_i32 = arith.constant 0 : i32
    %c0_i32_0 = arith.constant 0 : i32
    %c0_i32_1 = arith.constant 0 : i32
    return %c0_i32, %c0_i32_0 : i32, i32
  }
  func.func @transform_8(%arg0: i32) -> (i32, i32) {
    %c0_i32 = arith.constant 0 : i32
    %c0_i32_0 = arith.constant 0 : i32
    %c0_i32_1 = arith.constant 0 : i32
    return %c0_i32, %c0_i32_0 : i32, i32
  }
  func.func @transform_9(%arg0: i32) -> (i32, i32) {
    %c0_i32 = arith.constant 0 : i32
    %c0_i32_0 = arith.constant 0 : i32
    %c0_i32_1 = arith.constant 0 : i32
    return %c0_i32, %c0_i32_0 : i32, i32
  }
  func.func @transform_10(%arg0: i32) -> (i32, i32) {
    %c0_i32 = arith.constant 0 : i32
    %c0_i32_0 = arith.constant 0 : i32
    %c0_i32_1 = arith.constant 0 : i32
    return %c0_i32, %c0_i32_0 : i32, i32
  }
  func.func @transform_11(%arg0: i32) -> (i32, i32) {
    %c0_i32 = arith.constant 0 : i32
    %c0_i32_0 = arith.constant 0 : i32
    return %arg0, %c0_i32 : i32, i32
  }
}

</mosaic_0001>

<bundles_post_ra>
// kernel: tpu_custom_call.1
= control target key start
LH: loop header
LB: loop body
LE: loop exit
PB: predicated region body
PF: predicated region fallthrough
CT: control target
= control target key end

     0   :  { %s3614_s17 = smov 0   ;;  %s3616_s18 = smov 0   ;;  %s4357_s0 = inlined_call_operand.vmem [shape: f32[500,32], index: 0, kind: input, shape index: {}]   ;;  %s4358_s1 = inlined_call_operand.vmem [shape: f32[500,32], index: 1, kind: input, shape index: {}]   ;;  %s4359_s2 = inlined_call_operand.vmem [shape: f32[500,32], index: 2, kind: input, shape index: {}]   ;;  %s4360_s3 = inlined_call_operand.vmem [shape: f32[500,32], index: 3, kind: input, shape index: {}]   ;;  %s4361_s4 = inlined_call_operand.vmem [shape: bf16[32,256], index: 4, kind: input, shape index: {}]   ;;  %s4362_s5 = inlined_call_operand.vmem [shape: bf16[32,256], index: 5, kind: input, shape index: {}]   ;;  %s4363_s6 = inlined_call_operand.vmem [shape: f32[1,256], index: 6, kind: input, shape index: {}]   ;;  %s4364_s7 = inlined_call_operand.vmem [shape: bf16[256,128], index: 7, kind: input, shape index: {}]   ;;  %s4365_s8 = inlined_call_operand.vmem [shape: f32[1,128], index: 8, kind: input, shape index: {}]   ;;  %s4366_s9 = inlined_call_operand.vmem [shape: bf16[128,32], index: 9, kind: input, shape index: {}]   ;;  %s4367_s10 = inlined_call_operand.vmem [shape: f32[1,32], index: 10, kind: input, shape index: {}]   ;;  %s4368_s11 = inlined_call_operand.vmem [shape: bf16[500,32], index: 11, kind: output, shape index: {}]  }
   0x1   :  { %s3618_s19 = smov 0  }
   0x2 LB: > { %s3627_s20 = sadd.s32 4294967295, %s3519_s19   ;;  %s3629_s21 = sadd.s32 1, %s3519_s19   ;;  %s3519_s19 = sphi %s3618_s19, %s4375_s19   ;;  %s3515_s18 = sphi %s3616_s18, %s4374_s18   ;;  %s3511_s17 = sphi %s3614_s17, %s4373_s17  }
   0x3   : > { %s276_s22 = ssub.s32 %s3519_s19, %s3629_s21  ;;  %s279_s23 = sadd.s32 1, %s3515_s18 }
   0x4   : > { %p277_p0 = scmp.eq.s32.totalorder %s276_s22, 0  ;;  %p289_p1 = scmp.ne.s32.totalorder %s3515_s18, %s3511_s17 }
   0x5   : > { %p290_p2 = scmp.eq.s32.totalorder %s3627_s20, 1  ;;  %p2800_p3 = scmp.ge.s32.totalorder %s3519_s19, 1 }
   0x6   : > { %s3637_s24 = scalar_select %p277_p0, %s3515_s18, %s279_s23  }
   0x7   : > { %p3639_p4 = por %p290_p2, %p289_p1  ;;  %p403_p5 = scmp.lt.s32.totalorder %s3519_s19, 3 }
   0x9   : > { %p404_p6 = pnand %p2800_p3, %p403_p5 }
   0xa   : > { %v3301_v0 = vld [vmem:[%s4362_s5 + $0x4] ss:$8 sps:$4 sm:$0xff] (!%p404_p6)   ;;  %s3647_s28 = sshll.u32 (!%p404_p6), %s3627_s20, 5  ;;  %v3303_v1 = vld [vmem:[%s4362_s5] ss:$8 sps:$4 sm:$0xff] (!%p404_p6)   ;;  %v3553_v2 = vmov (!%p404_p6), 0  }
   0xb   : > { %407 = sbr.rel (%p404_p6) target bundleno = 1010 (0x3f2), region = 64  ;;  %932 = vmatprep.mubr.bf16.mxu0 (!%p404_p6), %v3553_v2  ;;  %p478_p7 = scmp.lt.s32.totalorder (!%p404_p6), %s3647_s28, 62  ;;  %1052 = vmatprep.mubr.bf16.mxu1 (!%p404_p6), %v3553_v2  ;;  %v3304_v3 = vld [vmem:[%s4362_s5 + $0x14] ss:$8 sps:$4 sm:$0xff] (!%p404_p6)   ;;  %v3306_v4 = vld [vmem:[%s4362_s5 + $0x10] ss:$8 sps:$4 sm:$0xff] (!%p404_p6)  }
   0xc   : > { %900 = vmatprep.subr.bf16.mxu0 (!%p404_p6), %v3301_v0  ;;  %3144 = vmatprep.subr.bf16.mxu1 (!%p404_p6), %v3301_v0  ;;  %v3309_v5 = vld [vmem:[%s4361_s4 + $0x4] ss:$8 sps:$4 sm:$0xff] (!%p404_p6)   ;;  %vm851_vm0 = vcmask (!%p404_p6), 261120   ;;  %v3307_v8 = vld [vmem:[%s4361_s4] ss:$8 sps:$4 sm:$0xff] (!%p404_p6)   ;;  %s470_s19 = sand.u32 (!%p404_p6), 1, %s3511_s17  }
   0xd   : > { %901 = vmatpush1.bf16.msra.mxu0 (!%p404_p6), %v3303_v1  ;;  %3146 = vmatpush1.bf16.msra.mxu1 (!%p404_p6), %v3303_v1  ;;  %v3312_v10 = vld [vmem:[%s4361_s4 + $0x14] ss:$8 sps:$4 sm:$0xff] (!%p404_p6)   ;;  %v3310_v13 = vld [vmem:[%s4361_s4 + $0x10] ss:$8 sps:$4 sm:$0xff] (!%p404_p6)   ;;  %s2801_s22 = sshll.u32 (!%p404_p6), %s470_s19, 7  ;;  %vm2390_vm1 = vcmask (!%p404_p6), 257024  }
   0xe   : > { %902 = vmatprep.subr.bf16.mxu0 (!%p404_p6), %v3304_v3  ;;  %3145 = vmatprep.subr.bf16.mxu1 (!%p404_p6), %v3304_v3 }
  0x11   : > { %903 = vmatpush1.bf16.msra.mxu0 (!%p404_p6), %v3306_v4  ;;  %3147 = vmatpush1.bf16.msra.mxu1 (!%p404_p6), %v3306_v4 }
  0x12   : > { %s479_s16 = scalar_select %p478_p7, %s3647_s28, 62  ;;  %1161 = vmatprep.subr.bf16.mxu0 %v3309_v5 }
  0x13   : > { %s2431_s17 = ssub.s32 (%p3639_p4), 63, %s3647_s28 }
  0x14   : > { %s3665_s23 = sshll.u32 %s479_s16, 3  ;;  %p2432_p8 = scmp.lt.s32.totalorder (%p3639_p4), %s2431_s17, 32 }
  0x15   : > { %s3671_s29 = scalar_lea.vmem %s4360_s3, %s3665_s23  ;;  %s3738_s26 = scalar_lea.vmem %s4358_s1, %s3665_s23 }
  0x16   : > { %v775_v6 = vld [vmem:[%s3671_s29] sm:$0xff]  ;;  %v776_v7 = vld [vmem:[%s3671_s29 + $0x8] sm:$0xff]  ;;  %v777_v11 = vld [vmem:[%s3671_s29 + $0x10] sm:$0xff]  ;;  %s3745_s12 = scalar_lea.vmem %s4357_s0, %s3665_s23  ;;  %s3754_s15 = scalar_lea.vmem %s4359_s2, %s3665_s23 }
  0x17   : > { %v807_v9 = vpack.c.bf16 %v776_v7, %v775_v6  ;;  %v778_v12 = vld [vmem:[%s3671_s29 + $0x18] sm:$0xff]  ;;  %v779_v15 = vld [vmem:[%s3671_s29 + $0x20] sm:$0xff]  ;;  %v780_v16 = vld [vmem:[%s3671_s29 + $0x28] sm:$0xff] }
  0x18   : > { %v808_v14 = vpack.c.bf16 %v778_v12, %v777_v11  ;;  %v809_v17 = vpack.c.bf16 %v780_v16, %v779_v15  ;;  %v781_v18 = vld [vmem:[%s3671_s29 + $0x30] sm:$0xff]  ;;  %v782_v19 = vld [vmem:[%s3671_s29 + $0x38] sm:$0xff]  ;;  %v783_v21 = vld [vmem:[%s3671_s29 + $0x40] sm:$0xff] }
  0x19   : > { %2814 = vmatmul.mubr.msk.bf16.vlgmr.msra.gmra.mrb[0].mxu0 %vm851_vm0, %v807_v9  ;;  %v810_v20 = vpack.c.bf16 %v782_v19, %v781_v18  ;;  %v784_v22 = vld [vmem:[%s3671_s29 + $0x48] sm:$0xff]  ;;  %v785_v24 = vld [vmem:[%s3671_s29 + $0x50] sm:$0xff]  ;;  %v786_v25 = vld [vmem:[%s3671_s29 + $0x58] sm:$0xff] }
  0x1a   : > { %1162 = vmatpush1.bf16.msra.mxu0 %v3307_v8  ;;  %942 = vmatprep.mubr.bf16.mxu0 %v3553_v2  ;;  %v811_v23 = vpack.c.bf16 %v784_v22, %v783_v21  ;;  %v812_v26 = vpack.c.bf16 %v786_v25, %v785_v24  ;;  %v787_v27 = vld [vmem:[%s3671_s29 + $0x60] sm:$0xff]  ;;  %v788_v28 = vld [vmem:[%s3671_s29 + $0x68] sm:$0xff]  ;;  %v789_v30 = vld [vmem:[%s3671_s29 + $0x70] sm:$0xff] }
  0x1b   : > { %1163 = vmatprep.subr.bf16.mxu0 %v3312_v10  ;;  %v813_v29 = vpack.c.bf16 %v788_v28, %v787_v27  ;;  %v790_v31 = vld [vmem:[%s3671_s29 + $0x78] sm:$0xff]  ;;  %v799_v33 = vld [vmem:[%s3671_s29 + $0xc0] sm:$0xff]  ;;  %v800_v34 = vld [vmem:[%s3671_s29 + $0xc8] sm:$0xff] }
  0x1c   : > { %v814_v32 = vpack.c.bf16 %v790_v31, %v789_v30  ;;  %v791_v35 = vld [vmem:[%s3671_s29 + $0x80] sm:$0xff]  ;;  %v792_v36 = vld [vmem:[%s3671_s29 + $0x88] sm:$0xff]  ;;  %v819_v37 = vpack.c.bf16 %v800_v34, %v799_v33  ;;  %v801_v39 = vld [vmem:[%s3671_s29 + $0xd0] sm:$0xff] }
  0x1d   : > { %v815_v38 = vpack.c.bf16 %v792_v36, %v791_v35  ;;  %v802_v40 = vld [vmem:[%s3671_s29 + $0xd8] sm:$0xff]  ;;  %v793_v41 = vld [vmem:[%s3671_s29 + $0x90] sm:$0xff]  ;;  %v803_v45 = vld [vmem:[%s3671_s29 + $0xe0] sm:$0xff] }
  0x1e   : > { %1164 = vmatpush1.bf16.msra.mxu0 %v3310_v13  ;;  %2826 = vmatmul.mubr.msk.bf16.vlgmr.msra.gmra.mrb[0].mxu1 %vm851_vm0, %v819_v37  ;;  %v794_v42 = vld [vmem:[%s3671_s29 + $0x98] sm:$0xff]  ;;  %v820_v43 = vpack.c.bf16 %v802_v40, %v801_v39  ;;  %v804_v46 = vld [vmem:[%s3671_s29 + $0xe8] sm:$0xff]  ;;  %v795_v47 = vld [vmem:[%s3671_s29 + $0xa0] sm:$0xff] }
  0x1f   : > { %1062 = vmatprep.mubr.bf16.mxu1 %v3553_v2  ;;  %v816_v44 = vpack.c.bf16 %v794_v42, %v793_v41  ;;  %v796_v48 = vld [vmem:[%s3671_s29 + $0xa8] sm:$0xff]  ;;  %v821_v49 = vpack.c.bf16 %v804_v46, %v803_v45  ;;  %v567_v51 = vld [vmem:[%s3738_s26] sm:$0xff]  ;;  %v797_v55 = vld [vmem:[%s3671_s29 + $0xb0] sm:$0xff] }
  0x20   : > { %v817_v50 = vpack.c.bf16 %v796_v48, %v795_v47  ;;  %v568_v52 = vld [vmem:[%s3738_s26 + $0x8] sm:$0xff]  ;;  %v535_v53 = vld [vmem:[%s3745_s12] sm:$0xff]  ;;  %v663_v56 = vsub.f32 1.0, %v567_v51  ;;  %v805_v58 = vld [vmem:[%s3671_s29 + $0xf0] sm:$0xff] }
  0x21   : > { %2815 = vmatmul.mubr.msk.bf16.gmra.mrb[4].mxu0 %vm851_vm0, %v808_v14  ;;  %v536_v54 = vld [vmem:[%s3745_s12 + $0x8] sm:$0xff]  ;;  %v664_v57 = vsub.f32 1.0, %v568_v52  ;;  %v806_v59 = vld [vmem:[%s3671_s29 + $0xf8] sm:$0xff]  ;;  %v599_v61 = vld [vmem:[%s3754_s15] sm:$0xff]  ;;  %v631_v0 = vmul.f32 %v567_v51, %v535_v53 }
  0x22   : > { %952 = vmatprep.mubr.bf16.mxu0 %v3553_v2  ;;  %v798_v60 = vld [vmem:[%s3671_s29 + $0xb8] sm:$0xff]  ;;  %v600_v62 = vld [vmem:[%s3754_s15 + $0x8] sm:$0xff]  ;;  %v822_v63 = vpack.c.bf16 %v806_v59, %v805_v58  ;;  %v632_v3 = vmul.f32 %v568_v52, %v536_v54  ;;  %v695_v4 = vmul.f32 %v663_v56, %v599_v61  ;;  %v569_v6 = vld [vmem:[%s3738_s26 + $0x10] sm:$0xff] }
  0x23   : > { %v818_v1 = vpack.c.bf16 %v798_v60, %v797_v55  ;;  %v696_v5 = vmul.f32 %v664_v57, %v600_v62  ;;  %v570_v7 = vld [vmem:[%s3738_s26 + $0x18] sm:$0xff]  ;;  %v537_v8 = vld [vmem:[%s3745_s12 + $0x10] sm:$0xff]  ;;  %v665_v11 = vsub.f32 1.0, %v569_v6  ;;  %v3313_v13 = vld [vmem:[%s4364_s7 + $0x40] sm:$0xff]  }
  0x24   : > { %v727_v9 = vadd.f32 %v695_v4, %v631_v0  ;;  %v666_v12 = vsub.f32 1.0, %v570_v7  ;;  %v3314_v14 = vld [vmem:[%s4364_s7] sm:$0xff]   ;;  %v3315_v15 = vld [vmem:[%s4364_s7 + $0x48] sm:$0xff]   ;;  %v538_v16 = vld [vmem:[%s3745_s12 + $0x18] sm:$0xff]  ;;  %2960 = vmatprep.subr.bf16.mxu1 %v3313_v13  ;;  %v633_v19 = vmul.f32 %v569_v6, %v537_v8 }
  0x25   : > { %v728_v10 = vadd.f32 %v696_v5, %v632_v3  ;;  %v602_v18 = vld [vmem:[%s3754_s15 + $0x18] sm:$0xff]  ;;  %2961 = vmatpush3.bf16.msra.mxu1 %v3314_v14  ;;  %v634_v22 = vmul.f32 %v570_v7, %v538_v16  ;;  %v3317_v25 = vld [vmem:[%s4364_s7 + $0x50] sm:$0xff]   ;;  %v572_v27 = vld [vmem:[%s3738_s26 + $0x28] sm:$0xff] }
  0x26   : > { %2827 = vmatmul.mubr.msk.bf16.gmra.mrb[4].mxu1 %vm851_vm0, %v820_v43  ;;  %v698_v24 = vmul.f32 %v666_v12, %v602_v18  ;;  %2962 = vmatprep.subr.bf16.mxu1 %v3315_v15  ;;  %v3318_v28 = vld [vmem:[%s4364_s7 + $0x10] sm:$0xff]   ;;  %v539_v31 = vld [vmem:[%s3745_s12 + $0x20] sm:$0xff]  ;;  %v668_v33 = vsub.f32 1.0, %v572_v27  ;;  %v3319_v34 = vld [vmem:[%s4364_s7 + $0x58] sm:$0xff]  }
  0x27   : > { %1072 = vmatprep.mubr.bf16.mxu1 %v3553_v2  ;;  %v759_v21 = vpack.c.bf16 %v728_v10, %v727_v9  ;;  %v540_v35 = vld [vmem:[%s3745_s12 + $0x28] sm:$0xff]  ;;  %v603_v36 = vld [vmem:[%s3754_s15 + $0x20] sm:$0xff]  ;;  %v3320_v39 = vld [vmem:[%s4364_s7 + $0x18] sm:$0xff]  }
  0x28   : > { %v730_v30 = vadd.f32 %v698_v24, %v634_v22  ;;  %v604_v37 = vld [vmem:[%s3754_s15 + $0x28] sm:$0xff]  ;;  %v636_v41 = vmul.f32 %v572_v27, %v540_v35  ;;  %v573_v45 = vld [vmem:[%s3738_s26 + $0x30] sm:$0xff]  ;;  %v574_v46 = vld [vmem:[%s3738_s26 + $0x38] sm:$0xff] }
  0x29   : > { %2816 = vmatmul.mubr.msk.bf16.gmra.mrb[8].mxu0 %vm851_vm0, %v809_v17  ;;  %v601_v17 = vld [vmem:[%s3754_s15 + $0x10] sm:$0xff]  ;;  %v700_v43 = vmul.f32 %v668_v33, %v604_v37  ;;  %v3322_v47 = vld [vmem:[%s4364_s7 + $0x20] sm:$0xff]   ;;  %v669_v51 = vsub.f32 1.0, %v573_v45  ;;  %v670_v52 = vsub.f32 1.0, %v574_v46  ;;  %v3323_v53 = vld [vmem:[%s4364_s7 + $0x68] sm:$0xff]  }
  0x2a   : > { %962 = vmatprep.mubr.bf16.mxu0 %v3553_v2  ;;  %v542_v54 = vld [vmem:[%s3745_s12 + $0x38] sm:$0xff]  ;;  %v605_v55 = vld [vmem:[%s3754_s15 + $0x30] sm:$0xff]  ;;  %v575_v62 = vld [vmem:[%s3738_s26 + $0x40] sm:$0xff] }
  0x2b   : > { %v606_v56 = vld [vmem:[%s3754_s15 + $0x38] sm:$0xff]  ;;  %v638_v59 = vmul.f32 %v574_v46, %v542_v54  ;;  %v701_v60 = vmul.f32 %v669_v51, %v605_v55  ;;  %v543_v3 = vld [vmem:[%s3745_s12 + $0x40] sm:$0xff]  ;;  %v671_v4 = vsub.f32 1.0, %v575_v62  ;;  %v544_v6 = vld [vmem:[%s3745_s12 + $0x48] sm:$0xff] }
  0x2c   : > { %v702_v61 = vmul.f32 %v670_v52, %v606_v56  ;;  %v607_v7 = vld [vmem:[%s3754_s15 + $0x40] sm:$0xff]  ;;  %v608_v8 = vld [vmem:[%s3754_s15 + $0x48] sm:$0xff]  ;;  %v639_v9 = vmul.f32 %v575_v62, %v543_v3  ;;  %v577_v14 = vld [vmem:[%s3738_s26 + $0x50] sm:$0xff] }
  0x2d   : > { %v703_v12 = vmul.f32 %v671_v4, %v607_v7  ;;  %v578_v15 = vld [vmem:[%s3738_s26 + $0x58] sm:$0xff]  ;;  %v545_v18 = vld [vmem:[%s3745_s12 + $0x50] sm:$0xff]  ;;  %v547_v33 = vld [vmem:[%s3745_s12 + $0x60] sm:$0xff] }
  0x2e   : > { %2828 = vmatmul.mubr.msk.bf16.gmra.mrb[8].mxu1 %vm851_vm0, %v821_v49  ;;  %v732_v49 = vadd.f32 %v700_v43, %v636_v41  ;;  %v609_v22 = vld [vmem:[%s3754_s15 + $0x50] sm:$0xff]  ;;  %v641_v24 = vmul.f32 %v577_v14, %v545_v18  ;;  %v611_v37 = vld [vmem:[%s3754_s15 + $0x60] sm:$0xff]  ;;  %v550_v51 = vld [vmem:[%s3745_s12 + $0x78] sm:$0xff] }
  0x2f   : > { %1082 = vmatprep.mubr.bf16.mxu1 %v3553_v2  ;;  %v735_v16 = vadd.f32 %v703_v12, %v639_v9  ;;  %v613_v52 = vld [vmem:[%s3754_s15 + $0x70] sm:$0xff]  ;;  %v552_v3 = vld [vmem:[%s3745_s12 + $0x88] sm:$0xff]  ;;  %v615_v4 = vld [vmem:[%s3754_s15 + $0x80] sm:$0xff] }
  0x30   : > { %v586_v12 = vld [vmem:[%s3738_s26 + $0x98] sm:$0xff] }
  0x31   : > { %2817 = vmatmul.mubr.msk.bf16.gmra.mrb[12].mxu0 %vm851_vm0, %v810_v20  ;;  %v3316_v20 = vld [vmem:[%s4364_s7 + $0x8] sm:$0xff]   ;;  %v554_v18 = vld [vmem:[%s3745_s12 + $0x98] sm:$0xff] }
  0x32   : > { %972 = vmatprep.mubr.bf16.mxu0 %v3553_v2  ;;  %2963 = vmatpush3.bf16.msra.mxu1 %v3316_v20  ;;  %v674_v20 = vsub.f32 1.0, %v578_v15 }
  0x33   : > { %2964 = vmatprep.subr.bf16.mxu1 %v3317_v25 }
  0x36   : > { %2829 = vmatmul.mubr.msk.bf16.gmra.mrb[12].mxu1 %vm851_vm0, %v822_v63  ;;  %v576_v63 = vld [vmem:[%s3738_s26 + $0x48] sm:$0xff] }
  0x37   : > { %2965 = vmatpush3.bf16.msra.mxu1 %v3318_v28  ;;  %v672_v5 = vsub.f32 1.0, %v576_v63 }
  0x38   : > { %2966 = vmatprep.subr.bf16.mxu1 %v3319_v34 }
  0x39   : > { %2818 = vmatmul.mubr.msk.bf16.gmra.mrb[16].mxu0 %vm851_vm0, %v811_v23  ;;  %v697_v23 = vmul.f32 %v665_v11, %v601_v17  ;;  %v640_v11 = vmul.f32 %v576_v63, %v544_v6  ;;  %v704_v13 = vmul.f32 %v672_v5, %v608_v8  ;;  %v616_v5 = vld [vmem:[%s3754_s15 + $0x88] sm:$0xff] }
  0x3a   : > { %982 = vmatprep.mubr.bf16.mxu0 %v3553_v2 }
  0x3b   : > { %2967 = vmatpush3.bf16.msra.mxu1 %v3320_v39  ;;  %v736_v17 = vadd.f32 %v704_v13, %v640_v11  ;;  %v585_v11 = vld [vmem:[%s3738_s26 + $0x90] sm:$0xff] }
  0x3d   : > { %v763_v25 = vpack.c.bf16 %v736_v17, %v735_v16  ;;  %v681_v16 = vsub.f32 1.0, %v585_v11  ;;  %v682_v17 = vsub.f32 1.0, %v586_v12 }
  0x41   : > { %2819 = vmatmul.mubr.msk.bf16.gmra.mrb[20].mxu0 %vm851_vm0, %v812_v26  ;;  %v571_v26 = vld [vmem:[%s3738_s26 + $0x20] sm:$0xff] }
  0x42   : > { %992 = vmatprep.mubr.bf16.mxu0 %v3553_v2 }
  0x49   : > { %2820 = vmatmul.mubr.msk.bf16.gmra.mrb[24].mxu0 %vm851_vm0, %v813_v29  ;;  %v729_v29 = vadd.f32 %v697_v23, %v633_v19  ;;  %v673_v19 = vsub.f32 1.0, %v577_v14  ;;  %v610_v23 = vld [vmem:[%s3754_s15 + $0x58] sm:$0xff] }
  0x4a   : > { %1002 = vmatprep.mubr.bf16.mxu0 %v3553_v2  ;;  %v706_v28 = vmul.f32 %v674_v20, %v610_v23  ;;  %v618_v20 = vld [vmem:[%s3754_s15 + $0x98] sm:$0xff]  ;;  %v650_v23 = vmul.f32 %v586_v12, %v554_v18  ;;  %v3326_v12 = vld [vmem:[%s4364_s7 + $0x30] sm:$0xff]  }
  0x4b   : > { %v760_v40 = vpack.c.bf16 %v730_v30, %v729_v29  ;;  %v705_v27 = vmul.f32 %v673_v19, %v609_v22  ;;  %v579_v29 = vld [vmem:[%s3738_s26 + $0x60] sm:$0xff]  ;;  %v580_v30 = vld [vmem:[%s3738_s26 + $0x68] sm:$0xff]  ;;  %v617_v19 = vld [vmem:[%s3754_s15 + $0x90] sm:$0xff] }
  0x4c   : > { %v675_v34 = vsub.f32 1.0, %v579_v29  ;;  %v676_v35 = vsub.f32 1.0, %v580_v30  ;;  %v643_v39 = vmul.f32 %v579_v29, %v547_v33  ;;  %v556_v33 = vld [vmem:[%s3745_s12 + $0xa8] sm:$0xff] }
  0x51   : > { %2821 = vmatmul.mubr.msk.bf16.gmra.mrb[28].mxu0 %vm851_vm0, %v814_v32  ;;  %v667_v32 = vsub.f32 1.0, %v571_v26 }
  0x52   : > { %1012 = vmatprep.mubr.bf16.mxu0 %v3553_v2 }
  0x53   : > { %v699_v42 = vmul.f32 %v667_v32, %v603_v36  ;;  %v548_v36 = vld [vmem:[%s3745_s12 + $0x68] sm:$0xff] }
  0x54   : > { %v644_v41 = vmul.f32 %v580_v30, %v548_v36 }
  0x59   : > { %2822 = vmatmul.mubr.msk.bf16.gmra.mrb[32].mxu0 %vm851_vm0, %v815_v38  ;;  %v635_v38 = vmul.f32 %v571_v26, %v539_v31  ;;  %v737_v31 = vadd.f32 %v705_v27, %v641_v24  ;;  %v713_v24 = vmul.f32 %v681_v16, %v617_v19  ;;  %v588_v27 = vld [vmem:[%s3738_s26 + $0xa8] sm:$0xff]  ;;  %v562_v16 = vld [vmem:[%s3745_s12 + $0xd8] sm:$0xff] }
  0x5a   : > { %1022 = vmatprep.mubr.bf16.mxu0 %v3553_v2  ;;  %v684_v30 = vsub.f32 1.0, %v588_v27  ;;  %v3327_v19 = vld [vmem:[%s4364_s7 + $0x78] sm:$0xff]  }
  0x5b   : > { %v731_v48 = vadd.f32 %v699_v42, %v635_v38  ;;  %v612_v38 = vld [vmem:[%s3754_s15 + $0x68] sm:$0xff]  ;;  %v707_v42 = vmul.f32 %v675_v34, %v611_v37  ;;  %v619_v34 = vld [vmem:[%s3754_s15 + $0xa0] sm:$0xff]  ;;  %v652_v37 = vmul.f32 %v588_v27, %v556_v33 }
  0x5c   : > { %v708_v43 = vmul.f32 %v676_v35, %v612_v38  ;;  %v620_v35 = vld [vmem:[%s3754_s15 + $0xa8] sm:$0xff] }
  0x5d   : > { %v761_v58 = vpack.c.bf16 %v732_v49, %v731_v48  ;;  %v739_v46 = vadd.f32 %v707_v42, %v643_v39  ;;  %v549_v48 = vld [vmem:[%s3745_s12 + $0x70] sm:$0xff]  ;;  %v716_v39 = vmul.f32 %v684_v30, %v620_v35  ;;  %v590_v42 = vld [vmem:[%s3738_s26 + $0xb8] sm:$0xff]  ;;  %v563_v30 = vld [vmem:[%s3745_s12 + $0xe0] sm:$0xff] }
  0x5e   : > { %v564_v35 = vld [vmem:[%s3745_s12 + $0xe8] sm:$0xff] }
  0x61   : > { %2823 = vmatmul.mubr.msk.bf16.gmra.mrb[36].mxu0 %vm851_vm0, %v816_v44  ;;  %v3321_v44 = vld [vmem:[%s4364_s7 + $0x60] sm:$0xff]  }
  0x62   : > { %1032 = vmatprep.mubr.bf16.mxu0 %v3553_v2  ;;  %2968 = vmatprep.subr.bf16.mxu1 %v3321_v44  ;;  %v581_v44 = vld [vmem:[%s3738_s26 + $0x70] sm:$0xff] }
  0x63   : > { %2969 = vmatpush3.bf16.msra.mxu1 %v3322_v47  ;;  %v740_v47 = vadd.f32 %v708_v43, %v644_v41  ;;  %v677_v49 = vsub.f32 1.0, %v581_v44  ;;  %v645_v54 = vmul.f32 %v581_v44, %v549_v48  ;;  %v589_v41 = vld [vmem:[%s3738_s26 + $0xb0] sm:$0xff]  ;;  %v748_v44 = vadd.f32 %v716_v39, %v652_v37  ;;  %v558_v48 = vld [vmem:[%s3745_s12 + $0xb8] sm:$0xff]  ;;  %v628_v37 = vld [vmem:[%s3754_s15 + $0xe8] sm:$0xff] }
  0x64   : > { %2970 = vmatprep.subr.bf16.mxu1 %v3323_v53  ;;  %v614_v53 = vld [vmem:[%s3754_s15 + $0x78] sm:$0xff] }
  0x65   : > { %v765_v55 = vpack.c.bf16 %v740_v47, %v739_v46  ;;  %v685_v46 = vsub.f32 1.0, %v589_v41  ;;  %v686_v47 = vsub.f32 1.0, %v590_v42 }
  0x69   : > { %2824 = vmatmul.mubr.msk.bf16.gmra.mrb[40].mxu0 %vm851_vm0, %v817_v50  ;;  %v541_v50 = vld [vmem:[%s3745_s12 + $0x30] sm:$0xff] }
  0x6a   : > { %1042 = vmatprep.mubr.bf16.mxu0 %v3553_v2  ;;  %v637_v57 = vmul.f32 %v573_v45, %v541_v50  ;;  %v582_v45 = vld [vmem:[%s3738_s26 + $0x78] sm:$0xff] }
  0x6b   : > { %v678_v50 = vsub.f32 1.0, %v582_v45  ;;  %v646_v56 = vmul.f32 %v582_v45, %v550_v51  ;;  %v557_v45 = vld [vmem:[%s3745_s12 + $0xb0] sm:$0xff] }
  0x6c   : > { %v733_v0 = vadd.f32 %v701_v60, %v637_v57  ;;  %v709_v57 = vmul.f32 %v677_v49, %v613_v52  ;;  %v584_v60 = vld [vmem:[%s3738_s26 + $0x88] sm:$0xff]  ;;  %v621_v49 = vld [vmem:[%s3754_s15 + $0xb0] sm:$0xff]  ;;  %v653_v52 = vmul.f32 %v589_v41, %v557_v45 }
  0x6d   : > { %v680_v63 = vsub.f32 1.0, %v584_v60  ;;  %v648_v7 = vmul.f32 %v584_v60, %v552_v3  ;;  %v3324_v3 = vld [vmem:[%s4364_s7 + $0x28] sm:$0xff]  }
  0x6e   : > { %2971 = vmatpush3.bf16.msra.mxu1 %v3324_v3 }
  0x6f   : > { %v712_v9 = vmul.f32 %v680_v63, %v616_v5  ;;  %v560_v63 = vld [vmem:[%s3745_s12 + $0xc8] sm:$0xff] }
  0x71   : > { %2825 = vmatmul.mubr.msk.bf16.gmra.mrb[44].mxu0 %vm851_vm0, %v818_v1  ;;  %v734_v1 = vadd.f32 %v702_v61, %v638_v59  ;;  %v583_v59 = vld [vmem:[%s3738_s26 + $0x80] sm:$0xff]  ;;  %v744_v14 = vadd.f32 %v712_v9, %v648_v7  ;;  %v3325_v9 = vld [vmem:[%s4364_s7 + $0x70] sm:$0xff]  }
  0x72   : > { %1193 = vmatprep.mubr.bf16.mxu0 %v3553_v2  ;;  %v551_v61 = vld [vmem:[%s3745_s12 + $0x80] sm:$0xff]  ;;  %v679_v62 = vsub.f32 1.0, %v583_v59  ;;  %2972 = vmatprep.subr.bf16.mxu1 %v3325_v9  ;;  %v1356_v9 = vlaneseq }
  0x73   : > { %v762_v10 = vpack.c.bf16 %v734_v1, %v733_v0  ;;  %v741_v0 = vadd.f32 %v709_v57, %v645_v54  ;;  %v647_v6 = vmul.f32 %v583_v59, %v551_v61  ;;  %v717_v54 = vmul.f32 %v685_v46, %v621_v49  ;;  %v592_v57 = vld [vmem:[%s3738_s26 + $0xc8] sm:$0xff]  ;;  %2973 = vmatpush3.bf16.msra.mxu1 %v3326_v12 }
  0x74   : > { %v711_v8 = vmul.f32 %v679_v62, %v615_v4  ;;  %v688_v60 = vsub.f32 1.0, %v592_v57  ;;  %v656_v5 = vmul.f32 %v592_v57, %v560_v63  ;;  %2974 = vmatprep.subr.bf16.mxu1 %v3327_v19 }
  0x75   : > { %v749_v61 = vadd.f32 %v717_v54, %v653_v52  ;;  %v630_v52 = vld [vmem:[%s3754_s15 + $0xf8] sm:$0xff] }
  0x76   : > { %v743_v13 = vadd.f32 %v711_v8, %v647_v6 }
  0x79   : > { %2834 = vmatmul.mubr.msk.bf16.vlgmr.msra.gmra.mrb[0].mxu0 %vm851_vm0, %v759_v21  ;;  %v546_v21 = vld [vmem:[%s3745_s12 + $0x58] sm:$0xff] }
  0x7a   : > { %1203 = vmatprep.mubr.bf16.mxu0 %v3553_v2  ;;  %v642_v26 = vmul.f32 %v578_v15, %v546_v21  ;;  %v553_v15 = vld [vmem:[%s3745_s12 + $0x90] sm:$0xff]  ;;  %v767_v21 = vpack.c.bf16 %v744_v14, %v743_v13 }
  0x7b   : > { %v649_v22 = vmul.f32 %v585_v11, %v553_v15  ;;  %v594_v11 = vld [vmem:[%s3738_s26 + $0xd8] sm:$0xff]  ;;  %v561_v15 = vld [vmem:[%s3745_s12 + $0xd0] sm:$0xff] }
  0x7c   : > { %v738_v32 = vadd.f32 %v706_v28, %v642_v26  ;;  %v587_v26 = vld [vmem:[%s3738_s26 + $0xa0] sm:$0xff]  ;;  %v690_v18 = vsub.f32 1.0, %v594_v11 }
  0x7d   : > { %v555_v28 = vld [vmem:[%s3745_s12 + $0xa0] sm:$0xff]  ;;  %v683_v29 = vsub.f32 1.0, %v587_v26 }
  0x7e   : > { %v651_v36 = vmul.f32 %v587_v26, %v555_v28  ;;  %v595_v28 = vld [vmem:[%s3738_s26 + $0xe0] sm:$0xff] }
  0x7f   : > { %v715_v38 = vmul.f32 %v683_v29, %v619_v34  ;;  %v596_v29 = vld [vmem:[%s3738_s26 + $0xe8] sm:$0xff] }
  0x80   : > { %v660_v39 = vmul.f32 %v596_v29, %v564_v35 }
  0x81   : > { %2835 = vmatmul.mubr.msk.bf16.gmra.mrb[4].mxu0 %vm851_vm0, %v760_v40  ;;  %v764_v40 = vpack.c.bf16 %v738_v32, %v737_v31  ;;  %v745_v31 = vadd.f32 %v713_v24, %v649_v22  ;;  %v747_v43 = vadd.f32 %v715_v38, %v651_v36  ;;  %v3328_v22 = vld [vmem:[%s4364_s7 + $0x38] sm:$0xff]   ;;  %v627_v36 = vld [vmem:[%s3754_s15 + $0xe0] sm:$0xff]  ;;  %v659_v38 = vmul.f32 %v595_v28, %v563_v30 }
  0x82   : > { %1213 = vmatprep.mubr.bf16.mxu0 %v3553_v2  ;;  %2975 = vmatpush3.bf16.msra.mxu1 %v3328_v22  ;;  %v3329_v30 = vld [vmem:[%s4366_s9] sm:$0xff]  }
  0x83   : > { %v769_v51 = vpack.c.bf16 %v748_v44, %v747_v43  ;;  %v597_v43 = vld [vmem:[%s3738_s26 + $0xf0] sm:$0xff]  ;;  %v598_v44 = vld [vmem:[%s3738_s26 + $0xf8] sm:$0xff]  ;;  %3096 = vmatprep.subr.bf16.mxu1 %v3329_v30 }
  0x84   : > { %v694_v49 = vsub.f32 1.0, %v598_v44 }
  0x86   : > { %v726_v57 = vmul.f32 %v694_v49, %v630_v52 }
  0x89   : > { %2836 = vmatmul.mubr.msk.bf16.gmra.mrb[8].mxu0 %vm851_vm0, %v761_v58  ;;  %v710_v58 = vmul.f32 %v678_v50, %v614_v53  ;;  %v622_v50 = vld [vmem:[%s3754_s15 + $0xb8] sm:$0xff]  ;;  %v654_v53 = vmul.f32 %v590_v42, %v558_v48  ;;  %v693_v48 = vsub.f32 1.0, %v597_v43 }
  0x8a   : > { %1223 = vmatprep.mubr.bf16.mxu0 %v3553_v2 }
  0x8b   : > { %v742_v1 = vadd.f32 %v710_v58, %v646_v56  ;;  %v591_v56 = vld [vmem:[%s3738_s26 + $0xc0] sm:$0xff] }
  0x8c   : > { %v559_v58 = vld [vmem:[%s3745_s12 + $0xc0] sm:$0xff]  ;;  %v687_v59 = vsub.f32 1.0, %v591_v56 }
  0x8d   : > { %v655_v4 = vmul.f32 %v591_v56, %v559_v58 }
  0x91   : > { %2837 = vmatmul.mubr.msk.bf16.gmra.mrb[12].mxu0 %vm851_vm0, %v762_v10  ;;  %v766_v10 = vpack.c.bf16 %v742_v1, %v741_v0  ;;  %v623_v0 = vld [vmem:[%s3754_s15 + $0xc0] sm:$0xff]  ;;  %v624_v1 = vld [vmem:[%s3754_s15 + $0xc8] sm:$0xff] }
  0x92   : > { %1233 = vmatprep.mubr.bf16.mxu0 %v3553_v2  ;;  %v719_v6 = vmul.f32 %v687_v59, %v623_v0  ;;  %v720_v7 = vmul.f32 %v688_v60, %v624_v1 }
  0x94   : > { %v751_v13 = vadd.f32 %v719_v6, %v655_v4  ;;  %v752_v14 = vadd.f32 %v720_v7, %v656_v5 }
  0x99   : > { %2838 = vmatmul.mubr.msk.bf16.gmra.mrb[16].mxu0 %vm851_vm0, %v763_v25  ;;  %v714_v25 = vmul.f32 %v682_v17, %v618_v20  ;;  %v625_v20 = vld [vmem:[%s3754_s15 + $0xd0] sm:$0xff] }
  0x9a   : > { %1243 = vmatprep.mubr.bf16.mxu0 %v3553_v2 }
  0x9b   : > { %v746_v32 = vadd.f32 %v714_v25, %v650_v23  ;;  %v771_v23 = vpack.c.bf16 %v752_v14, %v751_v13  ;;  %v658_v25 = vmul.f32 %v594_v11, %v562_v16  ;;  %v1354_v16 = vld [vmem:[%s4363_s6] sm:$0x3] }
  0xa1   : > { %2839 = vmatmul.mubr.msk.bf16.gmra.mrb[20].mxu0 %vm851_vm0, %v764_v40  ;;  %v768_v40 = vpack.c.bf16 %v746_v32, %v745_v31  ;;  %v691_v31 = vsub.f32 1.0, %v595_v28  ;;  %v692_v32 = vsub.f32 1.0, %v596_v29 }
  0xa2   : > { %1253 = vmatprep.mubr.bf16.mxu0 %v3553_v2 }
  0xa3   : > { %v724_v41 = vmul.f32 %v692_v32, %v628_v37 }
  0xa5   : > { %v756_v46 = vadd.f32 %v724_v41, %v660_v39 }
  0xa9   : > { %2840 = vmatmul.mubr.msk.bf16.gmra.mrb[24].mxu0 %vm851_vm0, %v765_v55  ;;  %v718_v55 = vmul.f32 %v686_v47, %v622_v50  ;;  %v565_v47 = vld [vmem:[%s3745_s12 + $0xf0] sm:$0xff]  ;;  %v566_v50 = vld [vmem:[%s3745_s12 + $0xf8] sm:$0xff]  ;;  %s2957_s12 = sshll.u32 (%p3639_p4), %s3627_s20, 7 }
  0xaa   : > { %1263 = vmatprep.mubr.bf16.mxu0 %v3553_v2  ;;  %v661_v54 = vmul.f32 %v597_v43, %v565_v47  ;;  %s4229_s30 = scalar_lea.vmem (%p3639_p4), %s4368_s11, %s2957_s12  }
  0xab   : > { %v750_v62 = vadd.f32 %v718_v55, %v654_v53  ;;  %v662_v55 = vmul.f32 %v598_v44, %v566_v50 }
  0xad   : > { %v770_v8 = vpack.c.bf16 %v750_v62, %v749_v61  ;;  %v758_v59 = vadd.f32 %v726_v57, %v662_v55 }
  0xb1   : > { %2841 = vmatmul.mubr.msk.bf16.gmra.mrb[28].mxu0 %vm851_vm0, %v766_v10  ;;  %v593_v10 = vld [vmem:[%s3738_s26 + $0xd0] sm:$0xff]  ;;  %s4132_s26 = scalar_lea.vmem [#allocation2], %s2801_s22  }
  0xb2   : > { %1273 = vmatprep.mubr.bf16.mxu0 %v3553_v2  ;;  %v689_v17 = vsub.f32 1.0, %v593_v10  ;;  %v657_v24 = vmul.f32 %v593_v10, %v561_v15  ;;  %v1357_v10 = vshrl.u32 %v1356_v9, 7 }
  0xb4   : > { %v721_v26 = vmul.f32 %v689_v17, %v625_v20  ;;  %v1358_v15 = vsub.s32 0, %v1357_v10  ;;  %v1362_v17 = vsub.s32 1, %v1357_v10 }
  0xb6   : > { %v753_v33 = vadd.f32 %v721_v26, %v657_v24  ;;  %v3975_v19 = vrot.slane %v1354_v16, %v1362_v17 }
  0xb9   : > { %2842 = vmatmul.mubr.msk.bf16.gmra.mrb[32].mxu0 %vm851_vm0, %v767_v21  ;;  %v626_v21 = vld [vmem:[%s3754_s15 + $0xd8] sm:$0xff] }
  0xba   : > { %1283 = vmatprep.mubr.bf16.mxu0 %v3553_v2  ;;  %v722_v27 = vmul.f32 %v690_v18, %v626_v21  ;;  %v3973_v18 = vrot.slane %v1354_v16, %v1358_v15 }
  0xbc   : > { %v754_v34 = vadd.f32 %v722_v27, %v658_v25 }
  0xbe   : > { %v772_v42 = vpack.c.bf16 %v754_v34, %v753_v33 }
  0xc1   : > { %2843 = vmatmul.mubr.msk.bf16.gmra.mrb[36].mxu0 %vm851_vm0, %v768_v40  ;;  %v723_v40 = vmul.f32 %v691_v31, %v627_v36 }
  0xc2   : > { %1293 = vmatprep.mubr.bf16.mxu0 %v3553_v2 }
  0xc3   : > { %v755_v45 = vadd.f32 %v723_v40, %v659_v38  ;;  %v3330_v38 = vld [vmem:[%s4366_s9 + $0x8] sm:$0xff]  }
  0xc5   : > { %v773_v53 = vpack.c.bf16 %v756_v46, %v755_v45  ;;  %v3331_v46 = vld [vmem:[%s4366_s9 + $0x10] sm:$0xff]  }
  0xc9   : > { %2844 = vmatmul.mubr.msk.bf16.gmra.mrb[40].mxu0 %vm851_vm0, %v769_v51  ;;  %v629_v51 = vld [vmem:[%s3754_s15 + $0xf0] sm:$0xff] }
  0xca   : > { %1303 = vmatprep.mubr.bf16.mxu0 %v3553_v2  ;;  %v725_v56 = vmul.f32 %v693_v48, %v629_v51 }
  0xcc   : > { %v757_v58 = vadd.f32 %v725_v56, %v661_v54  ;;  %v3332_v54 = vld [vmem:[%s4366_s9 + $0x18] sm:$0xff]  }
  0xce   : > { %v774_v60 = vpack.c.bf16 %v758_v59, %v757_v58 }
  0xd1   : > { %2845 = vmatmul.mubr.msk.bf16.gmra.mrb[44].mxu0 %vm851_vm0, %v770_v8 }
  0xd2   : > { %1313 = vmatprep.mubr.bf16.mxu0 %v3553_v2 }
  0xd9   : > { %2846 = vmatmul.mubr.msk.bf16.gmra.mrb[48].mxu0 %vm851_vm0, %v771_v23 }
  0xda   : > { %1323 = vmatprep.mubr.bf16.mxu0 %v3553_v2 }
  0xe1   : > { %2847 = vmatmul.mubr.msk.bf16.gmra.mrb[52].mxu0 %vm851_vm0, %v772_v42 }
  0xe2   : > { %1333 = vmatprep.mubr.bf16.mxu0 %v3553_v2 }
  0xe9   : > { %2848 = vmatmul.mubr.msk.bf16.gmra.mrb[56].mxu0 %vm851_vm0, %v773_v53 }
  0xea   : > { %1343 = vmatprep.mubr.bf16.mxu0 %v3553_v2 }
  0xf1   : > { %2849 = vmatmul.mubr.msk.bf16.gmra.mrb[60].mxu0 %vm851_vm0, %v774_v60  ;;  %v3938_v61 = vpop.f32.mrb[0].mxu1 }
  0xf2   : > { %v3940_v62 = vpop.f32.mrb[1].mxu1 }
  0xf3   : > { %v3942_v63 = vpop.f32.mrb[2].mxu1 }
  0xf4   : > { %v3944_v0 = vpop.f32.mrb[3].mxu1 }
  0xf9   : > { %v3946_v1 = vpop.f32.mrb[4].mxu1 }
  0xfa   : > { %v3948_v3 = vpop.f32.mrb[5].mxu1 }
  0xfb   : > { %v3950_v4 = vpop.f32.mrb[6].mxu1 }
  0xfc   : > { %v3952_v5 = vpop.f32.mrb[7].mxu1 }
 0x101   : > { %v3954_v2 = vpop.f32.mrb[8].mxu1 }
 0x102   : > { %v3956_v6 = vpop.f32.mrb[9].mxu1 }
 0x103   : > { %v3958_v7 = vpop.f32.mrb[10].mxu1 }
 0x104   : > { %v3960_v8 = vpop.f32.mrb[11].mxu1 }
 0x109   : > { %v3962_v11 = vpop.f32.mrb[12].mxu1 }
 0x10a   : > { %v3964_v12 = vpop.f32.mrb[13].mxu1 }
 0x10b   : > { %v3966_v13 = vpop.f32.mrb[14].mxu1 }
 0x10c   : > { %v3968_v14 = vpop.f32.mrb[15].mxu1 }
 0x14c   : > { %v1195_v20 = vpop.f32.mrb[0].mxu0 }
 0x14d   : > { %v1366_v21 = vadd.f32 %v3973_v18, %v1195_v20  ;;  %v1197_v22 = vpop.f32.mrb[1].mxu0 }
 0x14e   : > { %v1367_v23 = vadd.f32 %v3975_v19, %v1197_v22  ;;  %v1199_v24 = vpop.f32.mrb[2].mxu0 }
 0x14f   : > { %v1368_v25 = vadd.f32 %v3973_v18, %v1199_v24  ;;  %v1201_v26 = vpop.f32.mrb[3].mxu0  ;;  %v1430_v28 = vmax.f32 %v1366_v21, 0.0 }
 0x150   : > { %v1369_v27 = vadd.f32 %v3975_v19, %v1201_v26  ;;  %v1431_v31 = vmax.f32 %v1367_v23, 0.0 }
 0x151   : > { %v1432_v29 = vmax.f32 %v1368_v25, 0.0 }
 0x152   : > { %v1433_v32 = vmax.f32 %v1369_v27, 0.0 }
 0x153   : > { %v1494_v33 = vpack.c.bf16 %v1432_v29, %v1430_v28 }
 0x154   : > { %v1495_v34 = vpack.c.bf16 %v1433_v32, %v1431_v31  ;;  %v1205_v35 = vpop.f32.mrb[4].mxu0 }
 0x155   : > { %v1370_v36 = vadd.f32 %v3973_v18, %v1205_v35  ;;  %v1207_v37 = vpop.f32.mrb[5].mxu0 }
 0x156   : > { %v1371_v39 = vadd.f32 %v3975_v19, %v1207_v37  ;;  %v1209_v40 = vpop.f32.mrb[6].mxu0  ;;  %1693 = vmatprep.mubr.bf16.mxu1 %v1495_v34 }
 0x157   : > { %v1372_v41 = vadd.f32 %v3973_v18, %v1209_v40  ;;  %v1211_v42 = vpop.f32.mrb[7].mxu0  ;;  %1694 = vmatmul.mubr.bf16.vlgmr.msra.gmra.mrb[16].mxu1 %v1494_v33  ;;  %v1434_v44 = vmax.f32 %v1370_v36, 0.0 }
 0x158   : > { %v1373_v43 = vadd.f32 %v3975_v19, %v1211_v42  ;;  %3097 = vmatpush3.bf16.msra.mxu1 %v3329_v30  ;;  %v1435_v47 = vmax.f32 %v1371_v39, 0.0 }
 0x159   : > { %v1436_v45 = vmax.f32 %v1372_v41, 0.0  ;;  %3098 = vmatprep.subr.bf16.mxu1 %v3330_v38 }
 0x15a   : > { %v1437_v48 = vmax.f32 %v1373_v43, 0.0 }
 0x15b   : > { %v1496_v49 = vpack.c.bf16 %v1436_v45, %v1434_v44 }
 0x15c   : > { %v1497_v50 = vpack.c.bf16 %v1437_v48, %v1435_v47  ;;  %v1215_v51 = vpop.f32.mrb[8].mxu0  ;;  %3099 = vmatpush3.bf16.msra.mxu1 %v3330_v38 }
 0x15d   : > { %v1374_v52 = vadd.f32 %v3973_v18, %v1215_v51  ;;  %v1217_v53 = vpop.f32.mrb[9].mxu0  ;;  %3100 = vmatprep.subr.bf16.mxu1 %v3331_v46 }
 0x15e   : > { %v1375_v55 = vadd.f32 %v3975_v19, %v1217_v53  ;;  %v1219_v56 = vpop.f32.mrb[10].mxu0  ;;  %1701 = vmatprep.mubr.bf16.mxu1 %v1497_v50 }
 0x15f   : > { %v1376_v57 = vadd.f32 %v3973_v18, %v1219_v56  ;;  %v1221_v58 = vpop.f32.mrb[11].mxu0  ;;  %1702 = vmatmul.mubr.bf16.gmra.mrb[20].mxu1 %v1496_v49  ;;  %v1438_v60 = vmax.f32 %v1374_v52, 0.0 }
 0x160   : > { %v1377_v59 = vadd.f32 %v3975_v19, %v1221_v58  ;;  %3101 = vmatpush3.bf16.msra.mxu1 %v3331_v46  ;;  %v1439_v10 = vmax.f32 %v1375_v55, 0.0 }
 0x161   : > { %v1440_v9 = vmax.f32 %v1376_v57, 0.0  ;;  %3102 = vmatprep.subr.bf16.mxu1 %v3332_v54 }
 0x162   : > { %v1441_v15 = vmax.f32 %v1377_v59, 0.0 }
 0x163   : > { %v1498_v16 = vpack.c.bf16 %v1440_v9, %v1438_v60 }
 0x164   : > { %v1499_v17 = vpack.c.bf16 %v1441_v15, %v1439_v10  ;;  %v1225_v20 = vpop.f32.mrb[12].mxu0  ;;  %3103 = vmatpush3.bf16.msra.mxu1 %v3332_v54 }
 0x165   : > { %v1378_v21 = vadd.f32 %v3973_v18, %v1225_v20  ;;  %v1227_v22 = vpop.f32.mrb[13].mxu0 }
 0x166   : > { %v1379_v23 = vadd.f32 %v3975_v19, %v1227_v22  ;;  %v1229_v24 = vpop.f32.mrb[14].mxu0  ;;  %1709 = vmatprep.mubr.bf16.mxu1 %v1499_v17 }
 0x167   : > { %v1380_v25 = vadd.f32 %v3973_v18, %v1229_v24  ;;  %v1231_v26 = vpop.f32.mrb[15].mxu0  ;;  %1710 = vmatmul.mubr.bf16.gmra.mrb[24].mxu1 %v1498_v16  ;;  %v1442_v28 = vmax.f32 %v1378_v21, 0.0 }
 0x168   : > { %v1381_v27 = vadd.f32 %v3975_v19, %v1231_v26  ;;  %v1443_v30 = vmax.f32 %v1379_v23, 0.0 }
 0x169   : > { %v1444_v29 = vmax.f32 %v1380_v25, 0.0 }
 0x16a   : > { %v1445_v31 = vmax.f32 %v1381_v27, 0.0 }
 0x16b   : > { %v1500_v32 = vpack.c.bf16 %v1444_v29, %v1442_v28 }
 0x16c   : > { %v1501_v33 = vpack.c.bf16 %v1445_v31, %v1443_v30  ;;  %v1235_v34 = vpop.f32.mrb[16].mxu0 }
 0x16d   : > { %v1382_v35 = vadd.f32 %v3973_v18, %v1235_v34  ;;  %v1237_v36 = vpop.f32.mrb[17].mxu0 }
 0x16e   : > { %v1383_v37 = vadd.f32 %v3975_v19, %v1237_v36  ;;  %v1239_v38 = vpop.f32.mrb[18].mxu0  ;;  %1717 = vmatprep.mubr.bf16.mxu1 %v1501_v33 }
 0x16f   : > { %v1384_v39 = vadd.f32 %v3973_v18, %v1239_v38  ;;  %v1241_v40 = vpop.f32.mrb[19].mxu0  ;;  %1718 = vmatmul.mubr.bf16.gmra.mrb[28].mxu1 %v1500_v32  ;;  %v1446_v42 = vmax.f32 %v1382_v35, 0.0 }
 0x170   : > { %v1385_v41 = vadd.f32 %v3975_v19, %v1241_v40  ;;  %v1447_v44 = vmax.f32 %v1383_v37, 0.0 }
 0x171   : > { %v1448_v43 = vmax.f32 %v1384_v39, 0.0 }
 0x172   : > { %v1449_v45 = vmax.f32 %v1385_v41, 0.0 }
 0x173   : > { %v1502_v46 = vpack.c.bf16 %v1448_v43, %v1446_v42 }
 0x174   : > { %v1503_v47 = vpack.c.bf16 %v1449_v45, %v1447_v44  ;;  %v1245_v48 = vpop.f32.mrb[20].mxu0 }
 0x175   : > { %v1386_v49 = vadd.f32 %v3973_v18, %v1245_v48  ;;  %v1247_v50 = vpop.f32.mrb[21].mxu0 }
 0x176   : > { %v1387_v51 = vadd.f32 %v3975_v19, %v1247_v50  ;;  %v1249_v52 = vpop.f32.mrb[22].mxu0  ;;  %1725 = vmatprep.mubr.bf16.mxu1 %v1503_v47 }
 0x177   : > { %v1388_v53 = vadd.f32 %v3973_v18, %v1249_v52  ;;  %v1251_v54 = vpop.f32.mrb[23].mxu0  ;;  %1726 = vmatmul.mubr.bf16.gmra.mrb[32].mxu1 %v1502_v46  ;;  %v1450_v56 = vmax.f32 %v1386_v49, 0.0 }
 0x178   : > { %v1389_v55 = vadd.f32 %v3975_v19, %v1251_v54  ;;  %v1451_v58 = vmax.f32 %v1387_v51, 0.0 }
 0x179   : > { %v1452_v57 = vmax.f32 %v1388_v53, 0.0 }
 0x17a   : > { %v1453_v59 = vmax.f32 %v1389_v55, 0.0 }
 0x17b   : > { %v1504_v60 = vpack.c.bf16 %v1452_v57, %v1450_v56 }
 0x17c   : > { %v1505_v9 = vpack.c.bf16 %v1453_v59, %v1451_v58  ;;  %v1255_v10 = vpop.f32.mrb[24].mxu0 }
 0x17d   : > { %v1390_v15 = vadd.f32 %v3973_v18, %v1255_v10  ;;  %v1257_v16 = vpop.f32.mrb[25].mxu0 }
 0x17e   : > { %v1391_v17 = vadd.f32 %v3975_v19, %v1257_v16  ;;  %v1259_v20 = vpop.f32.mrb[26].mxu0  ;;  %1733 = vmatprep.mubr.bf16.mxu1 %v1505_v9 }
 0x17f   : > { %v1392_v21 = vadd.f32 %v3973_v18, %v1259_v20  ;;  %v1261_v22 = vpop.f32.mrb[27].mxu0  ;;  %1734 = vmatmul.mubr.bf16.gmra.mrb[36].mxu1 %v1504_v60  ;;  %v1454_v24 = vmax.f32 %v1390_v15, 0.0 }
 0x180   : > { %v1393_v23 = vadd.f32 %v3975_v19, %v1261_v22  ;;  %v1455_v26 = vmax.f32 %v1391_v17, 0.0 }
 0x181   : > { %v1456_v25 = vmax.f32 %v1392_v21, 0.0 }
 0x182   : > { %v1457_v27 = vmax.f32 %v1393_v23, 0.0 }
 0x183   : > { %v1506_v28 = vpack.c.bf16 %v1456_v25, %v1454_v24 }
 0x184   : > { %v1507_v29 = vpack.c.bf16 %v1457_v27, %v1455_v26  ;;  %v1265_v30 = vpop.f32.mrb[28].mxu0 }
 0x185   : > { %v1394_v31 = vadd.f32 %v3973_v18, %v1265_v30  ;;  %v1267_v32 = vpop.f32.mrb[29].mxu0 }
 0x186   : > { %v1395_v33 = vadd.f32 %v3975_v19, %v1267_v32  ;;  %v1269_v34 = vpop.f32.mrb[30].mxu0  ;;  %1741 = vmatprep.mubr.bf16.mxu1 %v1507_v29 }
 0x187   : > { %v1396_v35 = vadd.f32 %v3973_v18, %v1269_v34  ;;  %v1271_v36 = vpop.f32.mrb[31].mxu0  ;;  %1742 = vmatmul.mubr.bf16.gmra.mrb[40].mxu1 %v1506_v28  ;;  %v1458_v38 = vmax.f32 %v1394_v31, 0.0 }
 0x188   : > { %v1397_v37 = vadd.f32 %v3975_v19, %v1271_v36  ;;  %v1459_v40 = vmax.f32 %v1395_v33, 0.0 }
 0x189   : > { %v1460_v39 = vmax.f32 %v1396_v35, 0.0 }
 0x18a   : > { %v1461_v41 = vmax.f32 %v1397_v37, 0.0 }
 0x18b   : > { %v1508_v42 = vpack.c.bf16 %v1460_v39, %v1458_v38 }
 0x18c   : > { %v1509_v43 = vpack.c.bf16 %v1461_v41, %v1459_v40  ;;  %v1275_v44 = vpop.f32.mrb[32].mxu0 }
 0x18d   : > { %v1398_v45 = vadd.f32 %v3973_v18, %v1275_v44  ;;  %v1277_v46 = vpop.f32.mrb[33].mxu0 }
 0x18e   : > { %v1399_v47 = vadd.f32 %v3975_v19, %v1277_v46  ;;  %v1279_v48 = vpop.f32.mrb[34].mxu0  ;;  %1749 = vmatprep.mubr.bf16.mxu1 %v1509_v43 }
 0x18f   : > { %v1400_v49 = vadd.f32 %v3973_v18, %v1279_v48  ;;  %v1281_v50 = vpop.f32.mrb[35].mxu0  ;;  %1750 = vmatmul.mubr.bf16.gmra.mrb[44].mxu1 %v1508_v42  ;;  %v1462_v52 = vmax.f32 %v1398_v45, 0.0 }
 0x190   : > { %v1401_v51 = vadd.f32 %v3975_v19, %v1281_v50  ;;  %v1463_v54 = vmax.f32 %v1399_v47, 0.0 }
 0x191   : > { %v1464_v53 = vmax.f32 %v1400_v49, 0.0 }
 0x192   : > { %v1465_v55 = vmax.f32 %v1401_v51, 0.0 }
 0x193   : > { %v1510_v56 = vpack.c.bf16 %v1464_v53, %v1462_v52 }
 0x194   : > { %v1511_v57 = vpack.c.bf16 %v1465_v55, %v1463_v54  ;;  %v1285_v58 = vpop.f32.mrb[36].mxu0  ;;  %v3333_v55 = vld [vmem:[%s4366_s9 + $0x20] sm:$0xff]  }
 0x195   : > { %v1402_v59 = vadd.f32 %v3973_v18, %v1285_v58  ;;  %v1287_v60 = vpop.f32.mrb[37].mxu0  ;;  %3104 = vmatprep.subr.bf16.mxu1 %v3333_v55 }
 0x196   : > { %v1403_v9 = vadd.f32 %v3975_v19, %v1287_v60  ;;  %v1289_v10 = vpop.f32.mrb[38].mxu0  ;;  %1757 = vmatprep.mubr.bf16.mxu1 %v1511_v57  ;;  %3105 = vmatpush3.bf16.msra.mxu1 %v3333_v55 }
 0x197   : > { %v1404_v15 = vadd.f32 %v3973_v18, %v1289_v10  ;;  %v1291_v16 = vpop.f32.mrb[39].mxu0  ;;  %1758 = vmatmul.mubr.bf16.gmra.mrb[48].mxu1 %v1510_v56  ;;  %v1466_v20 = vmax.f32 %v1402_v59, 0.0 }
 0x198   : > { %v1405_v17 = vadd.f32 %v3975_v19, %v1291_v16  ;;  %v1467_v22 = vmax.f32 %v1403_v9, 0.0 }
 0x199   : > { %v1468_v21 = vmax.f32 %v1404_v15, 0.0 }
 0x19a   : > { %v1469_v23 = vmax.f32 %v1405_v17, 0.0 }
 0x19b   : > { %v1512_v24 = vpack.c.bf16 %v1468_v21, %v1466_v20 }
 0x19c   : > { %v1513_v25 = vpack.c.bf16 %v1469_v23, %v1467_v22  ;;  %v1295_v26 = vpop.f32.mrb[40].mxu0 }
 0x19d   : > { %v1406_v27 = vadd.f32 %v3973_v18, %v1295_v26  ;;  %v1297_v28 = vpop.f32.mrb[41].mxu0 }
 0x19e   : > { %v1407_v29 = vadd.f32 %v3975_v19, %v1297_v28  ;;  %v1299_v30 = vpop.f32.mrb[42].mxu0  ;;  %1765 = vmatprep.mubr.bf16.mxu1 %v1513_v25 }
 0x19f   : > { %v1408_v31 = vadd.f32 %v3973_v18, %v1299_v30  ;;  %v1301_v32 = vpop.f32.mrb[43].mxu0  ;;  %1766 = vmatmul.mubr.bf16.gmra.mrb[52].mxu1 %v1512_v24  ;;  %v1470_v34 = vmax.f32 %v1406_v27, 0.0 }
 0x1a0   : > { %v1409_v33 = vadd.f32 %v3975_v19, %v1301_v32  ;;  %v1471_v36 = vmax.f32 %v1407_v29, 0.0 }
 0x1a1   : > { %v1472_v35 = vmax.f32 %v1408_v31, 0.0 }
 0x1a2   : > { %v1473_v37 = vmax.f32 %v1409_v33, 0.0 }
 0x1a3   : > { %v1514_v38 = vpack.c.bf16 %v1472_v35, %v1470_v34 }
 0x1a4   : > { %v1515_v39 = vpack.c.bf16 %v1473_v37, %v1471_v36  ;;  %v1305_v40 = vpop.f32.mrb[44].mxu0 }
 0x1a5   : > { %v1410_v41 = vadd.f32 %v3973_v18, %v1305_v40  ;;  %v1307_v42 = vpop.f32.mrb[45].mxu0 }
 0x1a6   : > { %v1411_v43 = vadd.f32 %v3975_v19, %v1307_v42  ;;  %v1309_v44 = vpop.f32.mrb[46].mxu0  ;;  %1773 = vmatprep.mubr.bf16.mxu1 %v1515_v39 }
 0x1a7   : > { %v1412_v45 = vadd.f32 %v3973_v18, %v1309_v44  ;;  %v1311_v46 = vpop.f32.mrb[47].mxu0  ;;  %1774 = vmatmul.mubr.bf16.gmra.mrb[56].mxu1 %v1514_v38  ;;  %v1474_v48 = vmax.f32 %v1410_v41, 0.0 }
 0x1a8   : > { %v1413_v47 = vadd.f32 %v3975_v19, %v1311_v46  ;;  %v1475_v50 = vmax.f32 %v1411_v43, 0.0 }
 0x1a9   : > { %v1476_v49 = vmax.f32 %v1412_v45, 0.0 }
 0x1aa   : > { %v1477_v51 = vmax.f32 %v1413_v47, 0.0 }
 0x1ab   : > { %v1516_v52 = vpack.c.bf16 %v1476_v49, %v1474_v48 }
 0x1ac   : > { %v1517_v53 = vpack.c.bf16 %v1477_v51, %v1475_v50  ;;  %v1315_v54 = vpop.f32.mrb[48].mxu0 }
 0x1ad   : > { %v1316_v56 = vadd.f32 %v1315_v54, %v3938_v61  ;;  %v1317_v57 = vpop.f32.mrb[49].mxu0  ;;  %v3334_v61 = vld [vmem:[%s4366_s9 + $0x28] sm:$0xff]  }
 0x1ae   : > { %v1318_v58 = vadd.f32 %v1317_v57, %v3940_v62  ;;  %v1319_v59 = vpop.f32.mrb[50].mxu0  ;;  %1781 = vmatprep.mubr.bf16.mxu1 %v1517_v53  ;;  %3106 = vmatprep.subr.bf16.mxu1 %v3334_v61 }
 0x1af   : > { %v1414_v60 = vadd.f32 %v3973_v18, %v1316_v56  ;;  %v1320_v9 = vadd.f32 %v1319_v59, %v3942_v63  ;;  %v1321_v10 = vpop.f32.mrb[51].mxu0  ;;  %1782 = vmatmul.mubr.bf16.gmra.mrb[60].mxu1 %v1516_v52 }
 0x1b0   : > { %v1415_v15 = vadd.f32 %v3975_v19, %v1318_v58  ;;  %v1322_v16 = vadd.f32 %v1321_v10, %v3944_v0  ;;  %3107 = vmatpush3.bf16.msra.mxu1 %v3334_v61  ;;  %v3335_v0 = vld [vmem:[%s4366_s9 + $0x30] sm:$0xff]  }
 0x1b1   : > { %v1416_v62 = vadd.f32 %v3973_v18, %v1320_v9  ;;  %v1478_v20 = vmax.f32 %v1414_v60, 0.0  ;;  %3108 = vmatprep.subr.bf16.mxu1 %v3335_v0 }
 0x1b2   : > { %v1417_v17 = vadd.f32 %v3975_v19, %v1322_v16  ;;  %v1479_v22 = vmax.f32 %v1415_v15, 0.0 }
 0x1b3   : > { %v1480_v21 = vmax.f32 %v1416_v62, 0.0 }
 0x1b4   : > { %v1481_v63 = vmax.f32 %v1417_v17, 0.0  ;;  %v1325_v23 = vpop.f32.mrb[52].mxu0  ;;  %3109 = vmatpush3.bf16.msra.mxu1 %v3335_v0 }
 0x1b5   : > { %v1326_v24 = vadd.f32 %v1325_v23, %v3946_v1  ;;  %v1327_v25 = vpop.f32.mrb[53].mxu0  ;;  %v1518_v26 = vpack.c.bf16 %v1480_v21, %v1478_v20  ;;  %v3336_v1 = vld [vmem:[%s4366_s9 + $0x38] sm:$0xff]  }
 0x1b6   : > { %v1328_v27 = vadd.f32 %v1327_v25, %v3948_v3  ;;  %v1329_v28 = vpop.f32.mrb[54].mxu0  ;;  %v1519_v29 = vpack.c.bf16 %v1481_v63, %v1479_v22  ;;  %3110 = vmatprep.subr.bf16.mxu1 %v3336_v1  ;;  %v4084_v22 = vld [vmem:[%s4365_s8] ss:$0 sm:$0xff] }
 0x1b7   : > { %v1418_v30 = vadd.f32 %v3973_v18, %v1326_v24  ;;  %v1330_v31 = vadd.f32 %v1329_v28, %v3950_v4  ;;  %v1331_v32 = vpop.f32.mrb[55].mxu0 }
 0x1b8   : > { %v1419_v33 = vadd.f32 %v3975_v19, %v1328_v27  ;;  %v1332_v34 = vadd.f32 %v1331_v32, %v3952_v5  ;;  %1789 = vmatprep.mubr.bf16.mxu1 %v1519_v29  ;;  %3111 = vmatpush3.bf16.msra.mxu1 %v3336_v1 }
 0x1b9   : > { %v1420_v3 = vadd.f32 %v3973_v18, %v1330_v31  ;;  %1790 = vmatmul.mubr.bf16.gmra.mrb[64].mxu1 %v1518_v26  ;;  %v1482_v36 = vmax.f32 %v1418_v30, 0.0 }
 0x1ba   : > { %v1421_v35 = vadd.f32 %v3975_v19, %v1332_v34  ;;  %v1483_v4 = vmax.f32 %v1419_v33, 0.0 }
 0x1bb   : > { %v1484_v37 = vmax.f32 %v1420_v3, 0.0 }
 0x1bc   : > { %v1485_v38 = vmax.f32 %v1421_v35, 0.0  ;;  %v1335_v39 = vpop.f32.mrb[56].mxu0 }
 0x1bd   : > { %v1336_v5 = vadd.f32 %v1335_v39, %v3954_v2  ;;  %v1337_v40 = vpop.f32.mrb[57].mxu0  ;;  %v1520_v41 = vpack.c.bf16 %v1484_v37, %v1482_v36 }
 0x1be   : > { %v1338_v42 = vadd.f32 %v1337_v40, %v3956_v6  ;;  %v1339_v43 = vpop.f32.mrb[58].mxu0  ;;  %v1521_v44 = vpack.c.bf16 %v1485_v38, %v1483_v4 }
 0x1bf   : > { %v1422_v45 = vadd.f32 %v3973_v18, %v1336_v5  ;;  %v1340_v46 = vadd.f32 %v1339_v43, %v3958_v7  ;;  %v1341_v47 = vpop.f32.mrb[59].mxu0 }
 0x1c0   : > { %v1423_v48 = vadd.f32 %v3975_v19, %v1338_v42  ;;  %v1342_v49 = vadd.f32 %v1341_v47, %v3960_v8  ;;  %1797 = vmatprep.mubr.bf16.mxu1 %v1521_v44 }
 0x1c1   : > { %v1424_v50 = vadd.f32 %v3973_v18, %v1340_v46  ;;  %1798 = vmatmul.mubr.bf16.gmra.mrb[68].mxu1 %v1520_v41  ;;  %v1486_v51 = vmax.f32 %v1422_v45, 0.0 }
 0x1c2   : > { %v1425_v2 = vadd.f32 %v3975_v19, %v1342_v49  ;;  %v1487_v6 = vmax.f32 %v1423_v48, 0.0 }
 0x1c3   : > { %v1488_v52 = vmax.f32 %v1424_v50, 0.0 }
 0x1c4   : > { %v1489_v53 = vmax.f32 %v1425_v2, 0.0  ;;  %v1345_v54 = vpop.f32.mrb[60].mxu0 }
 0x1c5   : > { %v1346_v55 = vadd.f32 %v1345_v54, %v3962_v11  ;;  %v1347_v56 = vpop.f32.mrb[61].mxu0  ;;  %v1522_v7 = vpack.c.bf16 %v1488_v52, %v1486_v51 }
 0x1c6   : > { %v1348_v57 = vadd.f32 %v1347_v56, %v3964_v12  ;;  %v1349_v58 = vpop.f32.mrb[62].mxu0  ;;  %v1523_v59 = vpack.c.bf16 %v1489_v53, %v1487_v6 }
 0x1c7   : > { %v1426_v8 = vadd.f32 %v3973_v18, %v1346_v55  ;;  %v1350_v60 = vadd.f32 %v1349_v58, %v3966_v13  ;;  %v1351_v9 = vpop.f32.mrb[63].mxu0 }
 0x1c8   : > { %v1427_v10 = vadd.f32 %v3975_v19, %v1348_v57  ;;  %v1352_v15 = vadd.f32 %v1351_v9, %v3968_v14  ;;  %1805 = vmatprep.mubr.bf16.mxu1 %v1523_v59 }
 0x1c9   : > { %v1428_v16 = vadd.f32 %v3973_v18, %v1350_v60  ;;  %1806 = vmatmul.mubr.bf16.gmra.mrb[72].mxu1 %v1522_v7  ;;  %v1490_v61 = vmax.f32 %v1426_v8, 0.0 }
 0x1ca   : > { %v1429_v11 = vadd.f32 %v3975_v19, %v1352_v15  ;;  %v1491_v12 = vmax.f32 %v1427_v10, 0.0 }
 0x1cb   : > { %v1492_v62 = vmax.f32 %v1428_v16, 0.0 }
 0x1cc   : > { %v1493_v17 = vmax.f32 %v1429_v11, 0.0 }
 0x1cd   : > { %v1524_v20 = vpack.c.bf16 %v1492_v62, %v1490_v61 }
 0x1ce   : > { %v1525_v21 = vpack.c.bf16 %v1493_v17, %v1491_v12 }
 0x1d0   : > { %1813 = vmatprep.mubr.bf16.mxu1 %v1525_v21 }
 0x1d1   : > { %1814 = vmatmul.mubr.bf16.gmra.mrb[76].mxu1 %v1524_v20 }
 0x22a   : > { %v2976_v13 = vpop.f32.mrb[16].mxu1 }
 0x22b   : > { %v2977_v14 = vpop.f32.mrb[17].mxu1 }
 0x22c   : > { %v2978_v63 = vadd.f32 %v2977_v14, %v2976_v13  ;;  %v2979_v18 = vpop.f32.mrb[18].mxu1 }
 0x22d   : > { %v2980_v23 = vpop.f32.mrb[19].mxu1 }
 0x22e   : > { %v1696_v19 = vadd.f32 %v2978_v63, %v4084_v22  ;;  %v2981_v0 = vadd.f32 %v2980_v23, %v2979_v18 }
 0x230   : > { %v1699_v24 = vadd.f32 %v2981_v0, %v4084_v22  ;;  %v1822_v25 = vmax.f32 %v1696_v19, 0.0 }
 0x232   : > { %v1823_v26 = vmax.f32 %v1699_v24, 0.0  ;;  %v2982_v27 = vpop.f32.mrb[20].mxu1 }
 0x233   : > { %v2983_v28 = vpop.f32.mrb[21].mxu1 }
 0x234   : > { %v2984_v29 = vadd.f32 %v2983_v28, %v2982_v27  ;;  %v2985_v30 = vpop.f32.mrb[22].mxu1  ;;  %v1854_v31 = vpack.c.bf16 %v1823_v26, %v1822_v25 }
 0x235   : > { %v2986_v32 = vpop.f32.mrb[23].mxu1 }
 0x236   : > { %v1704_v33 = vadd.f32 %v2984_v29, %v4084_v22  ;;  %v2987_v34 = vadd.f32 %v2986_v32, %v2985_v30  ;;  %3112 = vmatprep.mubr.bf16.mxu1 %v1854_v31 }
 0x238   : > { %v1707_v1 = vadd.f32 %v2987_v34, %v4084_v22  ;;  %v1824_v3 = vmax.f32 %v1704_v33, 0.0 }
 0x23a   : > { %v1825_v35 = vmax.f32 %v1707_v1, 0.0  ;;  %v2988_v36 = vpop.f32.mrb[24].mxu1 }
 0x23b   : > { %v2989_v37 = vpop.f32.mrb[25].mxu1 }
 0x23c   : > { %v1855_v4 = vpack.c.bf16 %v1825_v35, %v1824_v3  ;;  %v2990_v38 = vadd.f32 %v2989_v37, %v2988_v36  ;;  %v2991_v39 = vpop.f32.mrb[26].mxu1 }
 0x23d   : > { %v2992_v5 = vpop.f32.mrb[27].mxu1 }
 0x23e   : > { %v1712_v40 = vadd.f32 %v2990_v38, %v4084_v22  ;;  %v2993_v41 = vadd.f32 %v2992_v5, %v2991_v39  ;;  %3113 = vmatmul.mubr.bf16.vlgmr.msra.gmra.mrb[80].mxu1 %v1855_v4 }
 0x240   : > { %v1715_v42 = vadd.f32 %v2993_v41, %v4084_v22  ;;  %v1826_v43 = vmax.f32 %v1712_v40, 0.0 }
 0x242   : > { %v1827_v44 = vmax.f32 %v1715_v42, 0.0  ;;  %v2994_v45 = vpop.f32.mrb[28].mxu1 }
 0x243   : > { %v2995_v46 = vpop.f32.mrb[29].mxu1 }
 0x244   : > { %v2996_v47 = vadd.f32 %v2995_v46, %v2994_v45  ;;  %v2997_v48 = vpop.f32.mrb[30].mxu1  ;;  %v1856_v49 = vpack.c.bf16 %v1827_v44, %v1826_v43 }
 0x245   : > { %v2998_v50 = vpop.f32.mrb[31].mxu1 }
 0x246   : > { %v1720_v2 = vadd.f32 %v2996_v47, %v4084_v22  ;;  %v2999_v51 = vadd.f32 %v2998_v50, %v2997_v48  ;;  %3116 = vmatprep.mubr.bf16.mxu1 %v1856_v49 }
 0x248   : > { %v1723_v52 = vadd.f32 %v2999_v51, %v4084_v22  ;;  %v1828_v6 = vmax.f32 %v1720_v2, 0.0 }
 0x24a   : > { %v1829_v53 = vmax.f32 %v1723_v52, 0.0  ;;  %v3000_v54 = vpop.f32.mrb[32].mxu1 }
 0x24b   : > { %v3001_v55 = vpop.f32.mrb[33].mxu1 }
 0x24c   : > { %v3002_v56 = vadd.f32 %v3001_v55, %v3000_v54  ;;  %v3003_v7 = vpop.f32.mrb[34].mxu1  ;;  %v1857_v57 = vpack.c.bf16 %v1829_v53, %v1828_v6 }
 0x24d   : > { %v3004_v58 = vpop.f32.mrb[35].mxu1 }
 0x24e   : > { %v1728_v59 = vadd.f32 %v3002_v56, %v4084_v22  ;;  %v3005_v8 = vadd.f32 %v3004_v58, %v3003_v7  ;;  %3117 = vmatmul.mubr.bf16.gmra.mrb[84].mxu1 %v1857_v57 }
 0x250   : > { %v1731_v60 = vadd.f32 %v3005_v8, %v4084_v22  ;;  %v1830_v9 = vmax.f32 %v1728_v59, 0.0 }
 0x252   : > { %v1831_v10 = vmax.f32 %v1731_v60, 0.0  ;;  %v3006_v15 = vpop.f32.mrb[36].mxu1 }
 0x253   : > { %v3007_v16 = vpop.f32.mrb[37].mxu1 }
 0x254   : > { %v3008_v11 = vadd.f32 %v3007_v16, %v3006_v15  ;;  %v3009_v61 = vpop.f32.mrb[38].mxu1  ;;  %v1858_v62 = vpack.c.bf16 %v1831_v10, %v1830_v9 }
 0x255   : > { %v3010_v12 = vpop.f32.mrb[39].mxu1 }
 0x256   : > { %v1736_v17 = vadd.f32 %v3008_v11, %v4084_v22  ;;  %v3011_v20 = vadd.f32 %v3010_v12, %v3009_v61  ;;  %3120 = vmatprep.mubr.bf16.mxu1 %v1858_v62 }
 0x258   : > { %v1739_v21 = vadd.f32 %v3011_v20, %v4084_v22  ;;  %v1832_v13 = vmax.f32 %v1736_v17, 0.0 }
 0x25a   : > { %v1833_v14 = vmax.f32 %v1739_v21, 0.0  ;;  %v3012_v63 = vpop.f32.mrb[40].mxu1 }
 0x25b   : > { %v3013_v18 = vpop.f32.mrb[41].mxu1 }
 0x25c   : > { %v3014_v23 = vadd.f32 %v3013_v18, %v3012_v63  ;;  %v3015_v19 = vpop.f32.mrb[42].mxu1  ;;  %v1859_v0 = vpack.c.bf16 %v1833_v14, %v1832_v13 }
 0x25d   : > { %v3016_v24 = vpop.f32.mrb[43].mxu1 }
 0x25e   : > { %v1744_v25 = vadd.f32 %v3014_v23, %v4084_v22  ;;  %v3017_v26 = vadd.f32 %v3016_v24, %v3015_v19  ;;  %3121 = vmatmul.mubr.bf16.gmra.mrb[88].mxu1 %v1859_v0 }
 0x260   : > { %v1747_v27 = vadd.f32 %v3017_v26, %v4084_v22  ;;  %v1834_v28 = vmax.f32 %v1744_v25, 0.0 }
 0x262   : > { %v1835_v29 = vmax.f32 %v1747_v27, 0.0  ;;  %v3018_v30 = vpop.f32.mrb[44].mxu1 }
 0x263   : > { %v3019_v31 = vpop.f32.mrb[45].mxu1 }
 0x264   : > { %v3020_v32 = vadd.f32 %v3019_v31, %v3018_v30  ;;  %v3021_v33 = vpop.f32.mrb[46].mxu1  ;;  %v1860_v34 = vpack.c.bf16 %v1835_v29, %v1834_v28 }
 0x265   : > { %v3022_v1 = vpop.f32.mrb[47].mxu1 }
 0x266   : > { %v1752_v3 = vadd.f32 %v3020_v32, %v4084_v22  ;;  %v3023_v35 = vadd.f32 %v3022_v1, %v3021_v33  ;;  %3124 = vmatprep.mubr.bf16.mxu1 %v1860_v34 }
 0x268   : > { %v1755_v36 = vadd.f32 %v3023_v35, %v4084_v22  ;;  %v1836_v37 = vmax.f32 %v1752_v3, 0.0 }
 0x26a   : > { %v1837_v4 = vmax.f32 %v1755_v36, 0.0  ;;  %v3024_v38 = vpop.f32.mrb[48].mxu1 }
 0x26b   : > { %v3025_v39 = vpop.f32.mrb[49].mxu1 }
 0x26c   : > { %v3026_v5 = vadd.f32 %v3025_v39, %v3024_v38  ;;  %v3027_v40 = vpop.f32.mrb[50].mxu1  ;;  %v1861_v41 = vpack.c.bf16 %v1837_v4, %v1836_v37 }
 0x26d   : > { %v3028_v42 = vpop.f32.mrb[51].mxu1 }
 0x26e   : > { %v1760_v43 = vadd.f32 %v3026_v5, %v4084_v22  ;;  %v3029_v44 = vadd.f32 %v3028_v42, %v3027_v40  ;;  %3125 = vmatmul.mubr.bf16.gmra.mrb[92].mxu1 %v1861_v41 }
 0x270   : > { %v1763_v45 = vadd.f32 %v3029_v44, %v4084_v22  ;;  %v1838_v46 = vmax.f32 %v1760_v43, 0.0 }
 0x272   : > { %v1839_v47 = vmax.f32 %v1763_v45, 0.0  ;;  %v3030_v48 = vpop.f32.mrb[52].mxu1 }
 0x273   : > { %v3031_v49 = vpop.f32.mrb[53].mxu1 }
 0x274   : > { %v3032_v50 = vadd.f32 %v3031_v49, %v3030_v48  ;;  %v3033_v2 = vpop.f32.mrb[54].mxu1  ;;  %v1862_v51 = vpack.c.bf16 %v1839_v47, %v1838_v46 }
 0x275   : > { %v3034_v52 = vpop.f32.mrb[55].mxu1 }
 0x276   : > { %v1768_v6 = vadd.f32 %v3032_v50, %v4084_v22  ;;  %v3035_v53 = vadd.f32 %v3034_v52, %v3033_v2  ;;  %3128 = vmatprep.mubr.bf16.mxu1 %v1862_v51 }
 0x278   : > { %v1771_v54 = vadd.f32 %v3035_v53, %v4084_v22  ;;  %v1840_v55 = vmax.f32 %v1768_v6, 0.0 }
 0x27a   : > { %v1841_v56 = vmax.f32 %v1771_v54, 0.0  ;;  %v3036_v7 = vpop.f32.mrb[56].mxu1 }
 0x27b   : > { %v3037_v57 = vpop.f32.mrb[57].mxu1 }
 0x27c   : > { %v3038_v58 = vadd.f32 %v3037_v57, %v3036_v7  ;;  %v3039_v59 = vpop.f32.mrb[58].mxu1  ;;  %v1863_v8 = vpack.c.bf16 %v1841_v56, %v1840_v55 }
 0x27d   : > { %v3040_v60 = vpop.f32.mrb[59].mxu1 }
 0x27e   : > { %v1776_v9 = vadd.f32 %v3038_v58, %v4084_v22  ;;  %v3041_v10 = vadd.f32 %v3040_v60, %v3039_v59  ;;  %3129 = vmatmul.mubr.bf16.gmra.mrb[96].mxu1 %v1863_v8  ;;  %v4121_v8 = vld [vmem:[%s4367_s10] ss:$0 sm:$0xff] }
 0x280   : > { %v1779_v15 = vadd.f32 %v3041_v10, %v4084_v22  ;;  %v1842_v16 = vmax.f32 %v1776_v9, 0.0 }
 0x282   : > { %v1843_v11 = vmax.f32 %v1779_v15, 0.0  ;;  %v3042_v61 = vpop.f32.mrb[60].mxu1 }
 0x283   : > { %v3043_v62 = vpop.f32.mrb[61].mxu1 }
 0x284   : > { %v3044_v12 = vadd.f32 %v3043_v62, %v3042_v61  ;;  %v3045_v17 = vpop.f32.mrb[62].mxu1  ;;  %v1864_v20 = vpack.c.bf16 %v1843_v11, %v1842_v16 }
 0x285   : > { %v3046_v21 = vpop.f32.mrb[63].mxu1 }
 0x286   : > { %v1784_v13 = vadd.f32 %v3044_v12, %v4084_v22  ;;  %v3047_v14 = vadd.f32 %v3046_v21, %v3045_v17  ;;  %3132 = vmatprep.mubr.bf16.mxu1 %v1864_v20 }
 0x288   : > { %v1787_v63 = vadd.f32 %v3047_v14, %v4084_v22  ;;  %v1844_v18 = vmax.f32 %v1784_v13, 0.0 }
 0x28a   : > { %v1845_v23 = vmax.f32 %v1787_v63, 0.0 }
 0x28c   : > { %v3048_v19 = vpop.f32.mrb[64].mxu1  ;;  %v1865_v0 = vpack.c.bf16 %v1845_v23, %v1844_v18 }
 0x28d   : > { %v3049_v24 = vpop.f32.mrb[65].mxu1 }
 0x28e   : > { %v3050_v25 = vadd.f32 %v3049_v24, %v3048_v19  ;;  %v3051_v26 = vpop.f32.mrb[66].mxu1  ;;  %3133 = vmatmul.mubr.bf16.gmra.mrb[100].mxu1 %v1865_v0 }
 0x28f   : > { %v3052_v27 = vpop.f32.mrb[67].mxu1 }
 0x290   : > { %v1792_v28 = vadd.f32 %v3050_v25, %v4084_v22  ;;  %v3053_v29 = vadd.f32 %v3052_v27, %v3051_v26 }
 0x292   : > { %v1795_v30 = vadd.f32 %v3053_v29, %v4084_v22  ;;  %v1846_v31 = vmax.f32 %v1792_v28, 0.0 }
 0x294   : > { %v1847_v32 = vmax.f32 %v1795_v30, 0.0  ;;  %v3054_v33 = vpop.f32.mrb[68].mxu1 }
 0x295   : > { %v3055_v34 = vpop.f32.mrb[69].mxu1 }
 0x296   : > { %v3056_v1 = vadd.f32 %v3055_v34, %v3054_v33  ;;  %v3057_v3 = vpop.f32.mrb[70].mxu1  ;;  %v1866_v35 = vpack.c.bf16 %v1847_v32, %v1846_v31 }
 0x297   : > { %v3058_v36 = vpop.f32.mrb[71].mxu1 }
 0x298   : > { %v1800_v37 = vadd.f32 %v3056_v1, %v4084_v22  ;;  %v3059_v4 = vadd.f32 %v3058_v36, %v3057_v3  ;;  %3136 = vmatprep.mubr.bf16.mxu1 %v1866_v35 }
 0x29a   : > { %v1803_v38 = vadd.f32 %v3059_v4, %v4084_v22  ;;  %v1848_v39 = vmax.f32 %v1800_v37, 0.0 }
 0x29c   : > { %v1849_v5 = vmax.f32 %v1803_v38, 0.0  ;;  %v3060_v40 = vpop.f32.mrb[72].mxu1 }
 0x29d   : > { %v3061_v41 = vpop.f32.mrb[73].mxu1 }
 0x29e   : > { %v3062_v42 = vadd.f32 %v3061_v41, %v3060_v40  ;;  %v3063_v43 = vpop.f32.mrb[74].mxu1  ;;  %v1867_v44 = vpack.c.bf16 %v1849_v5, %v1848_v39 }
 0x29f   : > { %v3064_v45 = vpop.f32.mrb[75].mxu1 }
 0x2a0   : > { %v1808_v46 = vadd.f32 %v3062_v42, %v4084_v22  ;;  %v3065_v47 = vadd.f32 %v3064_v45, %v3063_v43  ;;  %3137 = vmatmul.mubr.bf16.gmra.mrb[104].mxu1 %v1867_v44 }
 0x2a2   : > { %v1811_v48 = vadd.f32 %v3065_v47, %v4084_v22  ;;  %v1850_v49 = vmax.f32 %v1808_v46, 0.0 }
 0x2a4   : > { %v1851_v50 = vmax.f32 %v1811_v48, 0.0  ;;  %v3066_v2 = vpop.f32.mrb[76].mxu1 }
 0x2a5   : > { %v3067_v51 = vpop.f32.mrb[77].mxu1 }
 0x2a6   : > { %v3068_v52 = vadd.f32 %v3067_v51, %v3066_v2  ;;  %v3069_v6 = vpop.f32.mrb[78].mxu1  ;;  %v1868_v53 = vpack.c.bf16 %v1851_v50, %v1850_v49 }
 0x2a7   : > { %v3070_v54 = vpop.f32.mrb[79].mxu1 }
 0x2a8   : > { %v1816_v55 = vadd.f32 %v3068_v52, %v4084_v22  ;;  %v3071_v56 = vadd.f32 %v3070_v54, %v3069_v6  ;;  %3140 = vmatprep.mubr.bf16.mxu1 %v1868_v53 }
 0x2aa   : > { %v1819_v7 = vadd.f32 %v3071_v56, %v4084_v22  ;;  %v1852_v57 = vmax.f32 %v1816_v55, 0.0 }
 0x2ac   : > { %v1853_v58 = vmax.f32 %v1819_v7, 0.0 }
 0x2ae   : > { %v1869_v59 = vpack.c.bf16 %v1853_v58, %v1852_v57 }
 0x2b0   : > { %3141 = vmatmul.mubr.bf16.gmra.mrb[108].mxu1 %v1869_v59 }
 0x311   : > { %v3114_v60 = vpop.f32.mrb[80].mxu1 }
 0x312   : > { %v1984_v9 = vadd.f32 %v3114_v60, %v4121_v8  ;;  %v1975_v10 = vpop.f32.mrb[81].mxu1 }
 0x313   : > { %v1976_v15 = vadd.f32 %v4121_v8, %v1975_v10  ;;  %v3115_v16 = vpop.f32.mrb[82].mxu1 }
 0x314   : > { %v2104_v11 = vsub.f32 0.0, %v1984_v9  ;;  %v1987_v61 = vadd.f32 %v3115_v16, %v4121_v8  ;;  %v1978_v22 = vpop.f32.mrb[83].mxu1 }
 0x315   : > { %v2102_v62 = vsub.f32 0.0, %v1976_v15  ;;  %v1979_v12 = vadd.f32 %v4121_v8, %v1978_v22 }
 0x316   : > { %v2138_v17 = vmul.f32 1.442695, %v2104_v11  ;;  %v2105_v20 = vsub.f32 0.0, %v1987_v61 }
 0x317   : > { %v2134_v21 = vmul.f32 1.442695, %v2102_v62  ;;  %v2103_v13 = vsub.f32 0.0, %v1979_v12 }
 0x318   : > { %3337 = vpow2.f32 %v2138_v17  ;;  %v2140_v14 = vmul.f32 1.442695, %v2105_v20 }
 0x319   : > { %3339 = vpow2.f32 %v2134_v21  ;;  %v2136_v63 = vmul.f32 1.442695, %v2103_v13 }
 0x31a   : > { %3341 = vpow2.f32 %v2140_v14 }
 0x31b   : > { %3343 = vpow2.f32 %v2136_v63 }
 0x321   : > { %v3118_v18 = vpop.f32.mrb[84].mxu1 }
 0x322   : > { %v3338_v23 = vpop.eup %3337  ;;  %v2000_v19 = vadd.f32 %v3118_v18, %v4121_v8  ;;  %v1991_v0 = vpop.f32.mrb[85].mxu1 }
 0x323   : > { %v3340_v24 = vpop.eup %3339  ;;  %v2200_v25 = vadd.f32 1.0, %v3338_v23  ;;  %v1992_v26 = vadd.f32 %v4121_v8, %v1991_v0  ;;  %v3119_v27 = vpop.f32.mrb[86].mxu1 }
 0x324   : > { %v3342_v28 = vpop.eup %3341  ;;  %v2198_v29 = vadd.f32 1.0, %v3340_v24  ;;  %v2108_v30 = vsub.f32 0.0, %v2000_v19  ;;  %v2003_v31 = vadd.f32 %v3119_v27, %v4121_v8  ;;  %v1994_v32 = vpop.f32.mrb[87].mxu1 }
 0x325   : > { %v3344_v33 = vpop.eup %3343  ;;  %3345 = vrcp.f32 %v2200_v25  ;;  %v2201_v34 = vadd.f32 1.0, %v3342_v28  ;;  %v2106_v1 = vsub.f32 0.0, %v1992_v26  ;;  %v1995_v3 = vadd.f32 %v4121_v8, %v1994_v32 }
 0x326   : > { %3347 = vrcp.f32 %v2198_v29  ;;  %v2199_v35 = vadd.f32 1.0, %v3344_v33  ;;  %v2146_v36 = vmul.f32 1.442695, %v2108_v30  ;;  %v2109_v37 = vsub.f32 0.0, %v2003_v31 }
 0x327   : > { %3349 = vrcp.f32 %v2201_v34  ;;  %v2142_v4 = vmul.f32 1.442695, %v2106_v1  ;;  %v2107_v38 = vsub.f32 0.0, %v1995_v3 }
 0x328   : > { %3351 = vrcp.f32 %v2199_v35  ;;  %v2148_v39 = vmul.f32 1.442695, %v2109_v37 }
 0x329   : > { %3353 = vpow2.f32 %v2146_v36  ;;  %v2144_v5 = vmul.f32 1.442695, %v2107_v38 }
 0x32a   : > { %3355 = vpow2.f32 %v2142_v4 }
 0x32b   : > { %3357 = vpow2.f32 %v2148_v39 }
 0x32c   : > { %3359 = vpow2.f32 %v2144_v5 }
 0x32f   : > { %v3346_v40 = vpop.eup %3345 }
 0x330   : > { %v3348_v41 = vpop.eup %3347  ;;  %v2927_v42 = vpack.c.bf16 %v3346_v40, %v3346_v40 }
 0x331   : > { %v3350_v43 = vpop.eup %3349  ;;  %v2925_v44 = vpack.c.bf16 %v3348_v41, %v3348_v41  ;;  %v3122_v45 = vpop.f32.mrb[88].mxu1 }
 0x332   : > { %v3352_v46 = vpop.eup %3351  ;;  %2393 = vst.msk [vmem:[%s4132_s26 + $0x8] sm:$0xf] %vm2390_vm1, %v2927_v42  ;;  %v2928_v47 = vpack.c.bf16 %v3350_v43, %v3350_v43  ;;  %v2016_v48 = vadd.f32 %v3122_v45, %v4121_v8  ;;  %v2007_v49 = vpop.f32.mrb[89].mxu1 }
 0x333   : > { %v3354_v50 = vpop.eup %3353  ;;  %2391 = vst.msk [vmem:[%s4132_s26] sm:$0xf] %vm2390_vm1, %v2925_v44  ;;  %v2926_v2 = vpack.c.bf16 %v3352_v46, %v3352_v46  ;;  %v2008_v51 = vadd.f32 %v4121_v8, %v2007_v49  ;;  %v3123_v52 = vpop.f32.mrb[90].mxu1 }
 0x334   : > { %v3356_v6 = vpop.eup %3355  ;;  %2394 = vst.msk [vmem:[%s4132_s26 + $0xc] sm:$0xf] %vm2390_vm1, %v2928_v47  ;;  %v2204_v53 = vadd.f32 1.0, %v3354_v50  ;;  %v2112_v54 = vsub.f32 0.0, %v2016_v48  ;;  %v2019_v55 = vadd.f32 %v3123_v52, %v4121_v8  ;;  %v2010_v56 = vpop.f32.mrb[91].mxu1 }
 0x335   : > { %v3358_v7 = vpop.eup %3357  ;;  %2392 = vst.msk [vmem:[%s4132_s26 + $0x4] sm:$0xf] %vm2390_vm1, %v2926_v2  ;;  %v2202_v57 = vadd.f32 1.0, %v3356_v6  ;;  %v2110_v58 = vsub.f32 0.0, %v2008_v51  ;;  %v2011_v59 = vadd.f32 %v4121_v8, %v2010_v56 }
 0x336   : > { %v3360_v60 = vpop.eup %3359  ;;  %3361 = vrcp.f32 %v2204_v53  ;;  %v2205_v9 = vadd.f32 1.0, %v3358_v7  ;;  %v2154_v10 = vmul.f32 1.442695, %v2112_v54  ;;  %v2113_v15 = vsub.f32 0.0, %v2019_v55 }
 0x337   : > { %3363 = vrcp.f32 %v2202_v57  ;;  %v2203_v16 = vadd.f32 1.0, %v3360_v60  ;;  %v2150_v11 = vmul.f32 1.442695, %v2110_v58  ;;  %v2111_v61 = vsub.f32 0.0, %v2011_v59 }
 0x338   : > { %3365 = vrcp.f32 %v2205_v9  ;;  %v2156_v22 = vmul.f32 1.442695, %v2113_v15 }
 0x339   : > { %3367 = vrcp.f32 %v2203_v16  ;;  %v2152_v62 = vmul.f32 1.442695, %v2111_v61 }
 0x33a   : > { %3369 = vpow2.f32 %v2154_v10 }
 0x33b   : > { %3371 = vpow2.f32 %v2150_v11 }
 0x33c   : > { %3373 = vpow2.f32 %v2156_v22 }
 0x33d   : > { %3375 = vpow2.f32 %v2152_v62 }
 0x340   : > { %v3362_v12 = vpop.eup %3361 }
 0x341   : > { %v3364_v17 = vpop.eup %3363  ;;  %v2931_v20 = vpack.c.bf16 %v3362_v12, %v3362_v12  ;;  %v3126_v21 = vpop.f32.mrb[92].mxu1 }
 0x342   : > { %v3366_v13 = vpop.eup %3365  ;;  %v2929_v14 = vpack.c.bf16 %v3364_v17, %v3364_v17  ;;  %v2032_v63 = vadd.f32 %v3126_v21, %v4121_v8  ;;  %v2023_v18 = vpop.f32.mrb[93].mxu1 }
 0x343   : > { %v3368_v23 = vpop.eup %3367  ;;  %2397 = vst.msk [vmem:[%s4132_s26 + $0x18] sm:$0xf] %vm2390_vm1, %v2931_v20  ;;  %v2932_v19 = vpack.c.bf16 %v3366_v13, %v3366_v13  ;;  %v2024_v0 = vadd.f32 %v4121_v8, %v2023_v18  ;;  %v3127_v24 = vpop.f32.mrb[94].mxu1 }
 0x344   : > { %v3370_v25 = vpop.eup %3369  ;;  %2395 = vst.msk [vmem:[%s4132_s26 + $0x10] sm:$0xf] %vm2390_vm1, %v2929_v14  ;;  %v2930_v26 = vpack.c.bf16 %v3368_v23, %v3368_v23  ;;  %v2116_v27 = vsub.f32 0.0, %v2032_v63  ;;  %v2035_v28 = vadd.f32 %v3127_v24, %v4121_v8  ;;  %v2026_v29 = vpop.f32.mrb[95].mxu1 }
 0x345   : > { %v3372_v30 = vpop.eup %3371  ;;  %2398 = vst.msk [vmem:[%s4132_s26 + $0x1c] sm:$0xf] %vm2390_vm1, %v2932_v19  ;;  %v2208_v31 = vadd.f32 1.0, %v3370_v25  ;;  %v2114_v32 = vsub.f32 0.0, %v2024_v0  ;;  %v2027_v33 = vadd.f32 %v4121_v8, %v2026_v29 }
 0x346   : > { %v3374_v34 = vpop.eup %3373  ;;  %2396 = vst.msk [vmem:[%s4132_s26 + $0x14] sm:$0xf] %vm2390_vm1, %v2930_v26  ;;  %v2206_v1 = vadd.f32 1.0, %v3372_v30  ;;  %v2117_v3 = vsub.f32 0.0, %v2035_v28  ;;  %v2162_v37 = vmul.f32 1.442695, %v2116_v27 }
 0x347   : > { %v3376_v35 = vpop.eup %3375  ;;  %3377 = vrcp.f32 %v2208_v31  ;;  %v2209_v36 = vadd.f32 1.0, %v3374_v34  ;;  %v2115_v4 = vsub.f32 0.0, %v2027_v33  ;;  %v2158_v39 = vmul.f32 1.442695, %v2114_v32 }
 0x348   : > { %3379 = vrcp.f32 %v2206_v1  ;;  %v2207_v38 = vadd.f32 1.0, %v3376_v35  ;;  %v2164_v5 = vmul.f32 1.442695, %v2117_v3 }
 0x349   : > { %3381 = vrcp.f32 %v2209_v36  ;;  %v2160_v40 = vmul.f32 1.442695, %v2115_v4 }
 0x34a   : > { %3383 = vrcp.f32 %v2207_v38 }
 0x34b   : > { %3385 = vpow2.f32 %v2162_v37 }
 0x34c   : > { %3387 = vpow2.f32 %v2158_v39 }
 0x34d   : > { %3389 = vpow2.f32 %v2164_v5 }
 0x34e   : > { %3391 = vpow2.f32 %v2160_v40 }
 0x351   : > { %v3378_v41 = vpop.eup %3377  ;;  %v3130_v42 = vpop.f32.mrb[96].mxu1 }
 0x352   : > { %v3380_v43 = vpop.eup %3379  ;;  %v2935_v44 = vpack.c.bf16 %v3378_v41, %v3378_v41  ;;  %v2048_v45 = vadd.f32 %v3130_v42, %v4121_v8  ;;  %v2039_v46 = vpop.f32.mrb[97].mxu1 }
 0x353   : > { %v3382_v47 = vpop.eup %3381  ;;  %v2933_v48 = vpack.c.bf16 %v3380_v43, %v3380_v43  ;;  %v2040_v49 = vadd.f32 %v4121_v8, %v2039_v46  ;;  %v3131_v50 = vpop.f32.mrb[98].mxu1 }
 0x354   : > { %v3384_v2 = vpop.eup %3383  ;;  %2401 = vst.msk [vmem:[%s4132_s26 + $0x28] sm:$0xf] %vm2390_vm1, %v2935_v44  ;;  %v2936_v51 = vpack.c.bf16 %v3382_v47, %v3382_v47  ;;  %v2120_v52 = vsub.f32 0.0, %v2048_v45  ;;  %v2051_v6 = vadd.f32 %v3131_v50, %v4121_v8  ;;  %v2042_v53 = vpop.f32.mrb[99].mxu1 }
 0x355   : > { %v3386_v54 = vpop.eup %3385  ;;  %2399 = vst.msk [vmem:[%s4132_s26 + $0x20] sm:$0xf] %vm2390_vm1, %v2933_v48  ;;  %v2934_v55 = vpack.c.bf16 %v3384_v2, %v3384_v2  ;;  %v2118_v56 = vsub.f32 0.0, %v2040_v49  ;;  %v2043_v7 = vadd.f32 %v4121_v8, %v2042_v53 }
 0x356   : > { %v3388_v57 = vpop.eup %3387  ;;  %2402 = vst.msk [vmem:[%s4132_s26 + $0x2c] sm:$0xf] %vm2390_vm1, %v2936_v51  ;;  %v2212_v58 = vadd.f32 1.0, %v3386_v54  ;;  %v2121_v59 = vsub.f32 0.0, %v2051_v6  ;;  %v2170_v11 = vmul.f32 1.442695, %v2120_v52 }
 0x357   : > { %v3390_v60 = vpop.eup %3389  ;;  %2400 = vst.msk [vmem:[%s4132_s26 + $0x24] sm:$0xf] %vm2390_vm1, %v2934_v55  ;;  %v2210_v9 = vadd.f32 1.0, %v3388_v57  ;;  %v2119_v10 = vsub.f32 0.0, %v2043_v7  ;;  %v2166_v22 = vmul.f32 1.442695, %v2118_v56 }
 0x358   : > { %v3392_v15 = vpop.eup %3391  ;;  %3393 = vrcp.f32 %v2212_v58  ;;  %v2213_v16 = vadd.f32 1.0, %v3390_v60  ;;  %v2172_v62 = vmul.f32 1.442695, %v2121_v59 }
 0x359   : > { %3395 = vrcp.f32 %v2210_v9  ;;  %v2211_v61 = vadd.f32 1.0, %v3392_v15  ;;  %v2168_v12 = vmul.f32 1.442695, %v2119_v10 }
 0x35a   : > { %3397 = vrcp.f32 %v2213_v16 }
 0x35b   : > { %3399 = vrcp.f32 %v2211_v61 }
 0x35c   : > { %3401 = vpow2.f32 %v2170_v11 }
 0x35d   : > { %3403 = vpow2.f32 %v2166_v22 }
 0x35e   : > { %3405 = vpow2.f32 %v2172_v62 }
 0x35f   : > { %3407 = vpow2.f32 %v2168_v12 }
 0x361   : > { %v3134_v17 = vpop.f32.mrb[100].mxu1 }
 0x362   : > { %v3394_v20 = vpop.eup %3393  ;;  %v2064_v21 = vadd.f32 %v3134_v17, %v4121_v8  ;;  %v2055_v13 = vpop.f32.mrb[101].mxu1 }
 0x363   : > { %v3396_v14 = vpop.eup %3395  ;;  %v2939_v63 = vpack.c.bf16 %v3394_v20, %v3394_v20  ;;  %v2056_v18 = vadd.f32 %v4121_v8, %v2055_v13  ;;  %v3135_v23 = vpop.f32.mrb[102].mxu1 }
 0x364   : > { %v3398_v19 = vpop.eup %3397  ;;  %v2937_v0 = vpack.c.bf16 %v3396_v14, %v3396_v14  ;;  %v2124_v24 = vsub.f32 0.0, %v2064_v21  ;;  %v2067_v25 = vadd.f32 %v3135_v23, %v4121_v8  ;;  %v2058_v26 = vpop.f32.mrb[103].mxu1 }
 0x365   : > { %v3400_v27 = vpop.eup %3399  ;;  %2405 = vst.msk [vmem:[%s4132_s26 + $0x38] sm:$0xf] %vm2390_vm1, %v2939_v63  ;;  %v2940_v28 = vpack.c.bf16 %v3398_v19, %v3398_v19  ;;  %v2122_v29 = vsub.f32 0.0, %v2056_v18  ;;  %v2059_v30 = vadd.f32 %v4121_v8, %v2058_v26 }
 0x366   : > { %v3402_v31 = vpop.eup %3401  ;;  %2403 = vst.msk [vmem:[%s4132_s26 + $0x30] sm:$0xf] %vm2390_vm1, %v2937_v0  ;;  %v2938_v32 = vpack.c.bf16 %v3400_v27, %v3400_v27  ;;  %v2178_v33 = vmul.f32 1.442695, %v2124_v24  ;;  %v2125_v34 = vsub.f32 0.0, %v2067_v25 }
 0x367   : > { %v3404_v1 = vpop.eup %3403  ;;  %2406 = vst.msk [vmem:[%s4132_s26 + $0x3c] sm:$0xf] %vm2390_vm1, %v2940_v28  ;;  %v2216_v3 = vadd.f32 1.0, %v3402_v31  ;;  %v2123_v35 = vsub.f32 0.0, %v2059_v30  ;;  %v2174_v39 = vmul.f32 1.442695, %v2122_v29 }
 0x368   : > { %v3406_v36 = vpop.eup %3405  ;;  %2404 = vst.msk [vmem:[%s4132_s26 + $0x34] sm:$0xf] %vm2390_vm1, %v2938_v32  ;;  %v2214_v37 = vadd.f32 1.0, %v3404_v1  ;;  %3409 = vpow2.f32 %v2178_v33  ;;  %v2180_v40 = vmul.f32 1.442695, %v2125_v34 }
 0x369   : > { %v3408_v4 = vpop.eup %3407  ;;  %3411 = vrcp.f32 %v2216_v3  ;;  %v2217_v38 = vadd.f32 1.0, %v3406_v36  ;;  %v2176_v41 = vmul.f32 1.442695, %v2123_v35 }
 0x36a   : > { %3413 = vrcp.f32 %v2214_v37  ;;  %v2215_v5 = vadd.f32 1.0, %v3408_v4 }
 0x36b   : > { %3415 = vrcp.f32 %v2217_v38 }
 0x36c   : > { %3417 = vrcp.f32 %v2215_v5 }
 0x36d   : > { %3419 = vpow2.f32 %v2174_v39 }
 0x36e   : > { %3421 = vpow2.f32 %v2180_v40 }
 0x36f   : > { %3423 = vpow2.f32 %v2176_v41 }
 0x372   : > { %v3410_v42 = vpop.eup %3409 }
 0x373   : > { %v3412_v43 = vpop.eup %3411  ;;  %v2220_v44 = vadd.f32 1.0, %v3410_v42  ;;  %v3138_v45 = vpop.f32.mrb[104].mxu1 }
 0x374   : > { %v3414_v46 = vpop.eup %3413  ;;  %v2943_v47 = vpack.c.bf16 %v3412_v43, %v3412_v43  ;;  %v2080_v48 = vadd.f32 %v3138_v45, %v4121_v8  ;;  %v2071_v49 = vpop.f32.mrb[105].mxu1 }
 0x375   : > { %v3416_v50 = vpop.eup %3415  ;;  %v2941_v2 = vpack.c.bf16 %v3414_v46, %v3414_v46  ;;  %3425 = vrcp.f32 %v2220_v44  ;;  %v2072_v51 = vadd.f32 %v4121_v8, %v2071_v49  ;;  %v3139_v52 = vpop.f32.mrb[106].mxu1 }
 0x376   : > { %v3418_v6 = vpop.eup %3417  ;;  %2409 = vst.msk [vmem:[%s4132_s26 + $0x48] sm:$0xf] %vm2390_vm1, %v2943_v47  ;;  %v2944_v53 = vpack.c.bf16 %v3416_v50, %v3416_v50  ;;  %v2128_v54 = vsub.f32 0.0, %v2080_v48  ;;  %v2083_v55 = vadd.f32 %v3139_v52, %v4121_v8  ;;  %v2074_v56 = vpop.f32.mrb[107].mxu1 }
 0x377   : > { %v3420_v7 = vpop.eup %3419  ;;  %2407 = vst.msk [vmem:[%s4132_s26 + $0x40] sm:$0xf] %vm2390_vm1, %v2941_v2  ;;  %v2942_v57 = vpack.c.bf16 %v3418_v6, %v3418_v6  ;;  %v2126_v58 = vsub.f32 0.0, %v2072_v51  ;;  %v2075_v59 = vadd.f32 %v4121_v8, %v2074_v56 }
 0x378   : > { %v3422_v60 = vpop.eup %3421  ;;  %2410 = vst.msk [vmem:[%s4132_s26 + $0x4c] sm:$0xf] %vm2390_vm1, %v2944_v53  ;;  %v2218_v9 = vadd.f32 1.0, %v3420_v7  ;;  %v2129_v10 = vsub.f32 0.0, %v2083_v55  ;;  %v2186_v11 = vmul.f32 1.442695, %v2128_v54 }
 0x379   : > { %v3424_v15 = vpop.eup %3423  ;;  %2408 = vst.msk [vmem:[%s4132_s26 + $0x44] sm:$0xf] %vm2390_vm1, %v2942_v57  ;;  %v2221_v16 = vadd.f32 1.0, %v3422_v60  ;;  %v2127_v61 = vsub.f32 0.0, %v2075_v59  ;;  %v2182_v62 = vmul.f32 1.442695, %v2126_v58 }
 0x37a   : > { %3427 = vrcp.f32 %v2218_v9  ;;  %v2219_v22 = vadd.f32 1.0, %v3424_v15  ;;  %v2188_v12 = vmul.f32 1.442695, %v2129_v10 }
 0x37b   : > { %3429 = vrcp.f32 %v2221_v16  ;;  %v2184_v17 = vmul.f32 1.442695, %v2127_v61 }
 0x37c   : > { %3431 = vrcp.f32 %v2219_v22 }
 0x37d   : > { %3433 = vpow2.f32 %v2186_v11 }
 0x37e   : > { %3435 = vpow2.f32 %v2182_v62 }
 0x37f   : > { %v3426_v20 = vpop.eup %3425  ;;  %3437 = vpow2.f32 %v2188_v12 }
 0x380   : > { %v2947_v21 = vpack.c.bf16 %v3426_v20, %v3426_v20  ;;  %3439 = vpow2.f32 %v2184_v17 }
 0x382   : > { %2413 = vst.msk [vmem:[%s4132_s26 + $0x58] sm:$0xf] %vm2390_vm1, %v2947_v21 }
 0x383   : > { %v3142_v13 = vpop.f32.mrb[108].mxu1 }
 0x384   : > { %v3428_v14 = vpop.eup %3427  ;;  %v2096_v63 = vadd.f32 %v3142_v13, %v4121_v8  ;;  %v2087_v18 = vpop.f32.mrb[109].mxu1 }
 0x385   : > { %v3430_v23 = vpop.eup %3429  ;;  %v2945_v19 = vpack.c.bf16 %v3428_v14, %v3428_v14  ;;  %v2088_v0 = vadd.f32 %v4121_v8, %v2087_v18  ;;  %v3143_v24 = vpop.f32.mrb[110].mxu1 }
 0x386   : > { %v3432_v25 = vpop.eup %3431  ;;  %v2948_v26 = vpack.c.bf16 %v3430_v23, %v3430_v23  ;;  %v2132_v27 = vsub.f32 0.0, %v2096_v63  ;;  %v2099_v28 = vadd.f32 %v3143_v24, %v4121_v8  ;;  %v2090_v29 = vpop.f32.mrb[111].mxu1 }
 0x387   : > { %v3434_v30 = vpop.eup %3433  ;;  %2411 = vst.msk [vmem:[%s4132_s26 + $0x50] sm:$0xf] %vm2390_vm1, %v2945_v19  ;;  %v2946_v31 = vpack.c.bf16 %v3432_v25, %v3432_v25  ;;  %v2130_v32 = vsub.f32 0.0, %v2088_v0  ;;  %v2091_v33 = vadd.f32 %v4121_v8, %v2090_v29 }
 0x388   : > { %v3436_v34 = vpop.eup %3435  ;;  %2414 = vst.msk [vmem:[%s4132_s26 + $0x5c] sm:$0xf] %vm2390_vm1, %v2948_v26  ;;  %v2224_v1 = vadd.f32 1.0, %v3434_v30  ;;  %v2133_v3 = vsub.f32 0.0, %v2099_v28  ;;  %v2194_v39 = vmul.f32 1.442695, %v2132_v27 }
 0x389   : > { %v3438_v35 = vpop.eup %3437  ;;  %2412 = vst.msk [vmem:[%s4132_s26 + $0x54] sm:$0xf] %vm2390_vm1, %v2946_v31  ;;  %v2222_v36 = vadd.f32 1.0, %v3436_v34  ;;  %v2131_v37 = vsub.f32 0.0, %v2091_v33  ;;  %v2190_v40 = vmul.f32 1.442695, %v2130_v32 }
 0x38a   : > { %v3440_v4 = vpop.eup %3439  ;;  %3441 = vrcp.f32 %v2224_v1  ;;  %v2225_v38 = vadd.f32 1.0, %v3438_v35  ;;  %v2196_v8 = vmul.f32 1.442695, %v2133_v3 }
 0x38b   : > { %3443 = vrcp.f32 %v2222_v36  ;;  %v2223_v5 = vadd.f32 1.0, %v3440_v4  ;;  %v2192_v41 = vmul.f32 1.442695, %v2131_v37 }
 0x38c   : > { %3445 = vrcp.f32 %v2225_v38 }
 0x38d   : > { %3447 = vrcp.f32 %v2223_v5 }
 0x38e   : > { %3449 = vpow2.f32 %v2194_v39 }
 0x38f   : > { %3451 = vpow2.f32 %v2190_v40 }
 0x390   : > { %3453 = vpow2.f32 %v2196_v8 }
 0x391   : > { %3455 = vpow2.f32 %v2192_v41 }
 0x394   : > { %v3442_v42 = vpop.eup %3441 }
 0x395   : > { %v3444_v43 = vpop.eup %3443  ;;  %v2951_v44 = vpack.c.bf16 %v3442_v42, %v3442_v42 }
 0x396   : > { %v3446_v45 = vpop.eup %3445  ;;  %v2949_v46 = vpack.c.bf16 %v3444_v43, %v3444_v43 }
 0x397   : > { %v3448_v47 = vpop.eup %3447  ;;  %2417 = vst.msk [vmem:[%s4132_s26 + $0x68] sm:$0xf] %vm2390_vm1, %v2951_v44  ;;  %v2952_v48 = vpack.c.bf16 %v3446_v45, %v3446_v45 }
 0x398   : > { %v3450_v49 = vpop.eup %3449  ;;  %2415 = vst.msk [vmem:[%s4132_s26 + $0x60] sm:$0xf] %vm2390_vm1, %v2949_v46  ;;  %v2950_v50 = vpack.c.bf16 %v3448_v47, %v3448_v47 }
 0x399   : > { %v3452_v2 = vpop.eup %3451  ;;  %2418 = vst.msk [vmem:[%s4132_s26 + $0x6c] sm:$0xf] %vm2390_vm1, %v2952_v48  ;;  %v2228_v51 = vadd.f32 1.0, %v3450_v49 }
 0x39a   : > { %v3454_v52 = vpop.eup %3453  ;;  %2416 = vst.msk [vmem:[%s4132_s26 + $0x64] sm:$0xf] %vm2390_vm1, %v2950_v50  ;;  %v2226_v6 = vadd.f32 1.0, %v3452_v2 }
 0x39b   : > { %v3456_v53 = vpop.eup %3455  ;;  %3457 = vrcp.f32 %v2228_v51  ;;  %v2229_v54 = vadd.f32 1.0, %v3454_v52 }
 0x39c   : > { %3459 = vrcp.f32 %v2226_v6  ;;  %v2227_v55 = vadd.f32 1.0, %v3456_v53 }
 0x39d   : > { %3461 = vrcp.f32 %v2229_v54 }
 0x39e   : > { %3463 = vrcp.f32 %v2227_v55 }
 0x3a5   : > { %v3458_v56 = vpop.eup %3457  ;;  %2429 = sbr.rel (!%p3639_p4) target bundleno = 1010 (0x3f2), region = 68 }
 0x3a6   : > { %v3460_v7 = vpop.eup %3459  ;;  %v2955_v57 = vpack.c.bf16 %v3458_v56, %v3458_v56 }
 0x3a7   : > { %v3462_v58 = vpop.eup %3461  ;;  %v2953_v59 = vpack.c.bf16 %v3460_v7, %v3460_v7 }
 0x3a8   : > { %v3464_v60 = vpop.eup %3463  ;;  %2421 = vst.msk [vmem:[%s4132_s26 + $0x78] sm:$0xf] %vm2390_vm1, %v2955_v57  ;;  %v2956_v9 = vpack.c.bf16 %v3462_v58, %v3462_v58 }
 0x3a9   : > { %2419 = vst.msk [vmem:[%s4132_s26 + $0x70] sm:$0xf] %vm2390_vm1, %v2953_v59  ;;  %v2954_v10 = vpack.c.bf16 %v3464_v60, %v3464_v60 }
 0x3aa   : > { %2422 = vst.msk [vmem:[%s4132_s26 + $0x7c] sm:$0xf] %vm2390_vm1, %v2956_v9 }
 0x3ab   : > { %2420 = vst.msk [vmem:[%s4132_s26 + $0x74] sm:$0xf] %vm2390_vm1, %v2954_v10 }
 0x3ac   : > { %s4377_s17 = smov (!%p2432_p8, %s2431_s17), 32 }
 0x3ad   : > { %s2910_s13 = sshll.u32 %s4377_s17, 6 }
 0x3ae   : > { %p2913_p9 = scmp.eq.s32.totalorder %s2910_s13, 0 }
 0x3af   : > { %s4235_s14 = sshrl.u32 (!%p2913_p9), %s4377_s17, 5 }
 0x3b0   : > { %2440 = sbr.rel (%p2913_p9) target bundleno = 1010 (0x3f2), region = 72  ;;  %p2914_p10 = scmp.le.s32.totalorder (!%p2913_p9), %s4235_s14, 0 }
 0x3b7   : > { %2735 = sbr.rel (%p2914_p10) target bundleno = 989 (0x3dd), region = 153  ;;  %s4370_s20 = smov (!%p2914_p10), %s4229_s30 }
 0x3b8   : > { %s4371_s25 = smov (!%p2914_p10), %s4132_s26  ;;  %s4244_s28 = smov (!%p2914_p10), 0  }
 0x3b9   : > { %s4246_s23 = smov (!%p2914_p10), 0  }
 0x3be LB: >> { %v2456_v15 = vld [vmem:[%s3527_s25] sm:$0xf]  ;;  %v2458_v16 = vld [vmem:[%s3527_s25 + $0x4] sm:$0xf]  ;;  %v2460_v11 = vld [vmem:[%s3527_s25 + $0x8] sm:$0xf]  ;;  %s3535_s23 = sphi %s4246_s23, %s2450_s23   ;;  %s3531_s28 = sphi %s4244_s28, %s4372_s28   ;;  %s3527_s25 = sphi %s4371_s25, %s2525_s25   ;;  %s3523_s20 = sphi %s4370_s20, %s2526_s20  }
 0x3bf   : >> { %2457 = vst [vmem:[%s3523_s20] sm:$0xf] %v2456_v15  ;;  %2459 = vst [vmem:[%s3523_s20 + $0x4] sm:$0xf] %v2458_v16  ;;  %v2462_v61 = vld [vmem:[%s3527_s25 + $0xc] sm:$0xf]  ;;  %s2520_s29 = sadd.s32 1, %s3531_s28 }
 0x3c0   : >> { %2461 = vst [vmem:[%s3523_s20 + $0x8] sm:$0xf] %v2460_v11  ;;  %v2464_v22 = vld [vmem:[%s3527_s25 + $0x10] sm:$0xf]  ;;  %v2466_v62 = vld [vmem:[%s3527_s25 + $0x14] sm:$0xf]  ;;  %p2521_p11 = scmp.ge.s32.totalorder %s2520_s29, %s4235_s14 }
 0x3c1   : >> { %2463 = vst [vmem:[%s3523_s20 + $0xc] sm:$0xf] %v2462_v61  ;;  %2465 = vst [vmem:[%s3523_s20 + $0x10] sm:$0xf] %v2464_v22  ;;  %v2468_v12 = vld [vmem:[%s3527_s25 + $0x18] sm:$0xf] }
 0x3c2   : >> { %2467 = vst [vmem:[%s3523_s20 + $0x14] sm:$0xf] %v2466_v62  ;;  %v2470_v17 = vld [vmem:[%s3527_s25 + $0x1c] sm:$0xf]  ;;  %v2472_v20 = vld [vmem:[%s3527_s25 + $0x20] sm:$0xf] }
 0x3c3   : >> { %2469 = vst [vmem:[%s3523_s20 + $0x18] sm:$0xf] %v2468_v12  ;;  %2471 = vst [vmem:[%s3523_s20 + $0x1c] sm:$0xf] %v2470_v17  ;;  %v2474_v21 = vld [vmem:[%s3527_s25 + $0x24] sm:$0xf] }
 0x3c4   : >> { %2473 = vst [vmem:[%s3523_s20 + $0x20] sm:$0xf] %v2472_v20  ;;  %v2476_v13 = vld [vmem:[%s3527_s25 + $0x28] sm:$0xf]  ;;  %v2478_v14 = vld [vmem:[%s3527_s25 + $0x2c] sm:$0xf] }
 0x3c5   : >> { %2475 = vst [vmem:[%s3523_s20 + $0x24] sm:$0xf] %v2474_v21  ;;  %2477 = vst [vmem:[%s3523_s20 + $0x28] sm:$0xf] %v2476_v13  ;;  %v2480_v63 = vld [vmem:[%s3527_s25 + $0x30] sm:$0xf] }
 0x3c6   : >> { %2479 = vst [vmem:[%s3523_s20 + $0x2c] sm:$0xf] %v2478_v14  ;;  %v2482_v18 = vld [vmem:[%s3527_s25 + $0x34] sm:$0xf]  ;;  %v2484_v23 = vld [vmem:[%s3527_s25 + $0x38] sm:$0xf] }
 0x3c7   : >> { %2481 = vst [vmem:[%s3523_s20 + $0x30] sm:$0xf] %v2480_v63  ;;  %2483 = vst [vmem:[%s3523_s20 + $0x34] sm:$0xf] %v2482_v18  ;;  %v2486_v19 = vld [vmem:[%s3527_s25 + $0x3c] sm:$0xf] }
 0x3c8   : >> { %2485 = vst [vmem:[%s3523_s20 + $0x38] sm:$0xf] %v2484_v23  ;;  %v2488_v0 = vld [vmem:[%s3527_s25 + $0x40] sm:$0xf]  ;;  %v2490_v24 = vld [vmem:[%s3527_s25 + $0x44] sm:$0xf] }
 0x3c9   : >> { %2487 = vst [vmem:[%s3523_s20 + $0x3c] sm:$0xf] %v2486_v19  ;;  %2489 = vst [vmem:[%s3523_s20 + $0x40] sm:$0xf] %v2488_v0  ;;  %v2492_v25 = vld [vmem:[%s3527_s25 + $0x48] sm:$0xf] }
 0x3ca   : >> { %2491 = vst [vmem:[%s3523_s20 + $0x44] sm:$0xf] %v2490_v24  ;;  %v2494_v26 = vld [vmem:[%s3527_s25 + $0x4c] sm:$0xf]  ;;  %v2496_v27 = vld [vmem:[%s3527_s25 + $0x50] sm:$0xf] }
 0x3cb   : >> { %2493 = vst [vmem:[%s3523_s20 + $0x48] sm:$0xf] %v2492_v25  ;;  %2495 = vst [vmem:[%s3523_s20 + $0x4c] sm:$0xf] %v2494_v26  ;;  %v2498_v28 = vld [vmem:[%s3527_s25 + $0x54] sm:$0xf] }
 0x3cc   : >> { %2497 = vst [vmem:[%s3523_s20 + $0x50] sm:$0xf] %v2496_v27  ;;  %v2500_v29 = vld [vmem:[%s3527_s25 + $0x58] sm:$0xf]  ;;  %v2502_v30 = vld [vmem:[%s3527_s25 + $0x5c] sm:$0xf] }
 0x3cd   : >> { %2499 = vst [vmem:[%s3523_s20 + $0x54] sm:$0xf] %v2498_v28  ;;  %2501 = vst [vmem:[%s3523_s20 + $0x58] sm:$0xf] %v2500_v29  ;;  %v2504_v31 = vld [vmem:[%s3527_s25 + $0x60] sm:$0xf] }
 0x3ce   : >> { %2503 = vst [vmem:[%s3523_s20 + $0x5c] sm:$0xf] %v2502_v30  ;;  %v2506_v32 = vld [vmem:[%s3527_s25 + $0x64] sm:$0xf]  ;;  %v2508_v33 = vld [vmem:[%s3527_s25 + $0x68] sm:$0xf] }
 0x3cf   : >> { %2505 = vst [vmem:[%s3523_s20 + $0x60] sm:$0xf] %v2504_v31  ;;  %2507 = vst [vmem:[%s3523_s20 + $0x64] sm:$0xf] %v2506_v32  ;;  %v2510_v34 = vld [vmem:[%s3527_s25 + $0x6c] sm:$0xf] }
 0x3d0   : >> { %2509 = vst [vmem:[%s3523_s20 + $0x68] sm:$0xf] %v2508_v33  ;;  %v2512_v1 = vld [vmem:[%s3527_s25 + $0x70] sm:$0xf]  ;;  %v2514_v3 = vld [vmem:[%s3527_s25 + $0x74] sm:$0xf] }
 0x3d1   : >> { %2511 = vst [vmem:[%s3523_s20 + $0x6c] sm:$0xf] %v2510_v34  ;;  %2513 = vst [vmem:[%s3523_s20 + $0x70] sm:$0xf] %v2512_v1  ;;  %v2516_v35 = vld [vmem:[%s3527_s25 + $0x78] sm:$0xf] }
 0x3d2   : >> { %2515 = vst [vmem:[%s3523_s20 + $0x74] sm:$0xf] %v2514_v3  ;;  %v2518_v36 = vld [vmem:[%s3527_s25 + $0x7c] sm:$0xf]  ;;  %2517 = vst [vmem:[%s3523_s20 + $0x78] sm:$0xf] %v2516_v35 }
 0x3d3   : >> { %2519 = vst [vmem:[%s3523_s20 + $0x7c] sm:$0xf] %v2518_v36  ;;  %s4379_s29 = smov (%p2521_p11, %s2520_s29), 0  ;;  %s2450_s23 = sadd.s32 1, %s3535_s23  }
 0x3d4   : >> { %s2915_s16 = sshll.u32 %s4379_s29, 7  ;;  %p2449_p12 = scmp.ge.s32.totalorder %s2450_s23, %s4235_s14 }
 0x3d5   : >> { %s2525_s25 = scalar_lea.vmem %s4132_s26, %s2915_s16 [#allocation2]   ;;  %s2526_s20 = scalar_lea.vmem %s4229_s30, %s2915_s16  }
 0x3d6   : >> { %s4372_s28 = smov %s4379_s29  ;;  %2452 = sbr.rel (!%p2449_p12) target bundleno = 958 (0x3be), region = 159 }
 0x3dd PF: > { %s4339_s19 = sand.u32 31, %s4377_s17   ;;  %s2958_s22 = sshll.u32 %s4235_s14, 7 }
 0x3de   : > { %s2531_s12 = scalar_lea.vmem %s4132_s26, %s2958_s22 [#allocation2]   ;;  %s2533_s15 = scalar_lea.vmem %s4229_s30, %s2958_s22  }
 0x3df   : > { %p2920_p13 = scmp.le.s32.totalorder %s4339_s19, 0 }
 0x3e0   : > { %s3537_s27 = smov (!%p2920_p13), %s2533_s15   ;;  %s3541_s13 = smov (!%p2920_p13), %s2531_s12  }
 0x3e1   : > { %2749 = sbr.rel (%p2920_p13) target bundleno = 1010 (0x3f2), region = 164  ;;  %s3545_s16 = smov (!%p2920_p13), 0  }
 0x3e2   : > { %s3549_s29 = smov (!%p2920_p13), 0  }
 0x3e8 LB: >> { %v2543_v37 = vld [vmem:[%s3543_s13] sm:$0xf]  ;;  %s2545_s17 = sadd.s32 1, %s3547_s16  ;;  %s2537_s29 = sadd.s32 1, %s3551_s29   ;;  %s3551_s29 = sphi %s3549_s29, %s2537_s29   ;;  %s3547_s16 = sphi %s3545_s16, %s3546_s16   ;;  %s3543_s13 = sphi %s3541_s13, %s2550_s13   ;;  %s3539_s27 = sphi %s3537_s27, %s2551_s27  }
 0x3e9   : >> { %2544 = vst [vmem:[%s3539_s27] sm:$0xf] %v2543_v37  ;;  %p2546_p0 = scmp.ge.s32.totalorder %s2545_s17, %s4339_s19  ;;  %p2536_p1 = scmp.ge.s32.totalorder %s2537_s29, %s4339_s19 }
 0x3eb   : >> { %s4381_s17 = smov (%p2546_p0, %s2545_s17), 0  ;;  %2539 = sbr.rel (!%p2536_p1) target bundleno = 1000 (0x3e8), region = 170 }
 0x3ec   : >> { %s2921_s26 = sshll.u32 %s4381_s17, 2  ;;  %s3546_s16 = smov %s4381_s17  }
 0x3ed   : >> { %s2550_s13 = scalar_lea.vmem %s2531_s12, %s2921_s26 [#allocation2]   ;;  %s2551_s27 = scalar_lea.vmem %s2533_s15, %s2921_s26  }
 0x3f2 PF: > { %p18_p2 = scmp.ge.s32.totalorder %s3629_s21, 4   ;;  %s4373_s17 = smov %s3515_s18 }
 0x3f3   : > { %s4374_s18 = smov %s3637_s24  ;;  %s4375_s19 = smov %s3629_s21 }
 0x3f4   :  { %20 = sbr.rel (!%p18_p2) target bundleno = 2 (0x2), region = 181 }

</bundles_post_ra>
